<compile_context>
chip_gen: v7x
topology: tpu7x:2x2x1
jax: 0.10.0
libtpu: 0.0.40
codegen_flags: <defaults>
</compile_context>

<pallas_src>
import functools

import jax
import jax.numpy as jnp
from jax.experimental import pallas as pl
from jax.experimental.pallas import tpu as pltpu


def _round_up(v, m):
    return ((v + m - 1) // m) * m


def _snn_kernel(x_ref, w1_ref, b1_ref, w2_ref, b2_ref, out_ref,
                cur1_ref, syn1_ref, mem1_ref, spk1_ref,
                syn2_ref, mem2_ref, spk2_ref,
                *, alpha, beta, threshold, Tc, Bc, H, O, P, unroll):
    t_chunk = pl.program_id(1)

    # ---- (re)initialize the persistent LIF state at the first time-chunk ----
    @pl.when(t_chunk == 0)
    def _():
        # reset_0 = H(mem_{-1} - thr) with mem_{-1} = 0  ->  carried-spike init.
        init_spk = 1.0 if (0.0 - threshold) > 0.0 else 0.0
        syn1_ref[...] = jnp.zeros((Bc, H), jnp.float32)
        mem1_ref[...] = jnp.zeros((Bc, H), jnp.float32)
        spk1_ref[...] = jnp.full((Bc, H), init_spk, jnp.float32)
        syn2_ref[...] = jnp.zeros((Bc, O), jnp.float32)
        mem2_ref[...] = jnp.zeros((Bc, O), jnp.float32)
        spk2_ref[...] = jnp.full((Bc, O), init_spk, jnp.float32)

    # ---- fc1 is state-independent: one big MXU matmul per chunk ----
    in_dim = x_ref.shape[-1]
    x2d = x_ref[...].reshape(Tc * Bc, in_dim)
    cur1_ref[...] = (
        jnp.dot(x2d, w1_ref[...], preferred_element_type=jnp.float32) + b1_ref[...]
    )

    # Hoist loop invariants (don't re-broadcast / re-load inside the recurrence).
    w2 = w2_ref[...]
    b2 = jnp.broadcast_to(b2_ref[...], (Bc, O))
    thr = jnp.float32(threshold)
    pad = P - (2 * H + 2 * O)
    pad_zeros = jnp.zeros((Bc, pad), jnp.float32) if pad else None

    def step(s, carry):
        syn1, mem1, spk1, syn2, mem2, spk2 = carry

        start = pl.multiple_of(s * Bc, Bc)           # Bc is a multiple of 8 -> aligned
        cur1 = cur1_ref[pl.ds(start, Bc), :]         # (Bc, H), off the serial chain

        # layer-1 Synaptic LIF (subtract reset; reset == previous spike)
        syn1 = alpha * syn1 + cur1
        mem1 = beta * mem1 + syn1 - spk1 * thr
        spk1 = (mem1 > thr).astype(jnp.float32)

        # fc2 + layer-2 Synaptic LIF
        cur2 = jnp.dot(spk1, w2, preferred_element_type=jnp.float32) + b2
        syn2 = alpha * syn2 + cur2
        mem2 = beta * mem2 + syn2 - spk2 * thr
        spk2 = (mem2 > thr).astype(jnp.float32)

        # Single full-lane store: [spk1 | mem1 | spk2 | mem2 | pad], width P (mult. of 128).
        parts = [spk1, mem1, spk2, mem2]
        if pad_zeros is not None:
            parts.append(pad_zeros)
        out_ref[s, :, :] = jnp.concatenate(parts, axis=-1)

        return (syn1, mem1, spk1, syn2, mem2, spk2)

    carry0 = (syn1_ref[...], mem1_ref[...], spk1_ref[...],
              syn2_ref[...], mem2_ref[...], spk2_ref[...])
    syn1, mem1, spk1, syn2, mem2, spk2 = jax.lax.fori_loop(
        0, Tc, step, carry0, unroll=unroll)

    # Persist the state for the next time-chunk (scratch survives grid steps).
    syn1_ref[...] = syn1
    mem1_ref[...] = mem1
    spk1_ref[...] = spk1
    syn2_ref[...] = syn2
    mem2_ref[...] = mem2
    spk2_ref[...] = spk2


def snn_forward(x, w1, b1, w2, b2, *, alpha, beta, threshold,
                time_chunk=None, vmem_budget_bytes=12 * 1024 * 1024):
    """x: (T, B, in_dim); w1: (in_dim, H); b1: (1, H); w2: (H, O); b2: (1, O).

    Returns [spk1, mem1, spk2, mem2] with shapes (T,B,H), (T,B,H), (T,B,O), (T,B,O).
    """
    T, B, in_dim = x.shape
    H = w1.shape[1]
    O = w2.shape[1]

    Bp = _round_up(B, 8)                     # pad batch to full f32 sublane tiles
    # v7x has 2 TensorCores: add a "parallel" batch-chunk axis when the padded batch
    # splits into two sublane-aligned halves (no effect on single-TC v5e/v6e).
    NB = 2 if (Bp >= 16 and Bp % 16 == 0) else 1
    Bc = Bp // NB

    P = _round_up(2 * H + 2 * O, 128)        # lane-dense packed output width

    # ---- choose the time-chunk so the per-chunk VMEM footprint stays small, while the
    # ---- hoisted fc1 matmul keeps at least ~256 rows on the MXU when T allows it.
    if time_chunk is None:
        per_step = 4 * Bc * (2 * in_dim + 2 * P + H)   # dbl-buffered x/out + cur1 scratch
        tc_budget = max(1, vmem_budget_bytes // per_step)
        tc_pref = max(8, -(-256 // Bc))
        time_chunk = max(1, min(T, tc_pref, tc_budget, 64))
    Tc = int(time_chunk)
    Tp = _round_up(T, Tc)
    NT = Tp // Tc

    # Padded time steps / batch rows are computed on zeros and sliced off below.
    if Tp != T or Bp != B:
        x = jnp.pad(x, ((0, Tp - T), (0, Bp - B), (0, 0)))

    unroll = Tc if Tc <= 16 else 8           # full unroll for short chunks, partial otherwise

    kernel = functools.partial(
        _snn_kernel, alpha=alpha, beta=beta, threshold=threshold,
        Tc=Tc, Bc=Bc, H=H, O=O, P=P, unroll=unroll)

    grid_spec = pltpu.PrefetchScalarGridSpec(
        num_scalar_prefetch=0,
        grid=(NB, NT),
        in_specs=[
            pl.BlockSpec((Tc, Bc, in_dim), lambda b, t: (t, b, 0)),   # x chunk
            pl.BlockSpec((in_dim, H), lambda b, t: (0, 0)),           # w1
            pl.BlockSpec((1, H), lambda b, t: (0, 0)),                # b1
            pl.BlockSpec((H, O), lambda b, t: (0, 0)),                # w2
            pl.BlockSpec((1, O), lambda b, t: (0, 0)),                # b2
        ],
        out_specs=pl.BlockSpec((Tc, Bc, P), lambda b, t: (t, b, 0)),
        scratch_shapes=[
            pltpu.VMEM((Tc * Bc, H), jnp.float32),   # hoisted fc1 currents (per chunk)
            pltpu.VMEM((Bc, H), jnp.float32),        # syn1   (persists across chunks)
            pltpu.VMEM((Bc, H), jnp.float32),        # mem1
            pltpu.VMEM((Bc, H), jnp.float32),        # spk1   (== reset for next step)
            pltpu.VMEM((Bc, O), jnp.float32),        # syn2
            pltpu.VMEM((Bc, O), jnp.float32),        # mem2
            pltpu.VMEM((Bc, O), jnp.float32),        # spk2
        ],
    )

    # VMEM limit sized from the actual per-chunk footprint, with double-buffer headroom.
    x_chunk = Tc * Bc * in_dim * 4
    out_chunk = Tc * Bc * P * 4
    weights = (in_dim * H + H + H * O + O) * 4
    scratch = (Tc * Bc * H + 3 * Bc * H + 3 * Bc * O) * 4
    need = 2 * (x_chunk + out_chunk) + weights + scratch
    vmem_limit = int(min(64 * 1024 * 1024, max(2 * need, 16 * 1024 * 1024)))

    packed = pl.pallas_call(
        kernel,
        out_shape=jax.ShapeDtypeStruct((Tp, Bp, P), jnp.float32),
        grid_spec=grid_spec,
        compiler_params=pltpu.CompilerParams(
            dimension_semantics=("parallel", "arbitrary"),
            vmem_limit_bytes=vmem_limit,
        ),
    )(x, w1, b1, w2, b2)

    spk1 = packed[:T, :B, 0:H]
    mem1 = packed[:T, :B, H:2 * H]
    spk2 = packed[:T, :B, 2 * H:2 * H + O]
    mem2 = packed[:T, :B, 2 * H + O:2 * H + 2 * O]
    return [spk1, mem1, spk2, mem2]


def snn_reference(x, w1, b1, w2, b2, *, alpha, beta, threshold):
    """Pure-JAX reference (lax.scan) mirroring snn.Synaptic subtract-reset semantics."""
    def step(state, x_t):
        syn1, mem1, syn2, mem2 = state
        cur1 = x_t @ w1 + b1
        r1 = (mem1 > threshold).astype(jnp.float32)
        syn1 = alpha * syn1 + cur1
        mem1 = beta * mem1 + syn1 - r1 * threshold
        spk1 = (mem1 > threshold).astype(jnp.float32)
        cur2 = spk1 @ w2 + b2
        r2 = (mem2 > threshold).astype(jnp.float32)
        syn2 = alpha * syn2 + cur2
        mem2 = beta * mem2 + syn2 - r2 * threshold
        spk2 = (mem2 > threshold).astype(jnp.float32)
        return (syn1, mem1, syn2, mem2), (spk1, mem1, spk2, mem2)

    B = x.shape[1]
    H = w1.shape[1]
    O = w2.shape[1]
    init = (jnp.zeros((B, H)), jnp.zeros((B, H)),
            jnp.zeros((B, O)), jnp.zeros((B, O)))
    _, outs = jax.lax.scan(step, init, x)
    return list(outs)


def kaiming_uniform(key, fan_out, fan_in):
    # torch.nn.init.kaiming_uniform_ default: a=0 -> gain=sqrt(2), bound = gain*sqrt(3/fan_in)
    bound = jnp.sqrt(2.0) * jnp.sqrt(3.0 / fan_in)
    # stored transposed relative to PyTorch: (fan_in, fan_out) so the kernel does x @ W
    return jax.random.uniform(key, (fan_in, fan_out), jnp.float32, -bound, bound)


if __name__ == "__main__":
    alpha, beta, threshold = 0.9, 0.8, 1.0
    bias = [0.0, 0.0]

    key = jax.random.PRNGKey(0)
    kx, k1, k2, kx2 = jax.random.split(key, 4)

    # Config 1: small shapes, forced time-chunking (NT=3) to exercise the persistent
    # cross-chunk LIF state scratch.
    T, B, in_dim, hidden, out_size = 24, 4, 32, 32, 16
    x = jax.random.normal(kx, (T, B, in_dim), jnp.float32)
    w1 = kaiming_uniform(k1, hidden, in_dim)          # (in_dim, hidden)
    b1 = jnp.full((1, hidden), bias[0], jnp.float32)
    w2 = kaiming_uniform(k2, out_size, hidden)        # (hidden, out_size)
    b2 = jnp.full((1, out_size), bias[1], jnp.float32)

    outs = snn_forward(x, w1, b1, w2, b2, alpha=alpha, beta=beta,
                       threshold=threshold, time_chunk=8)
    outs = [jax.block_until_ready(o) for o in outs]
    refs = snn_reference(x, w1, b1, w2, b2, alpha=alpha, beta=beta, threshold=threshold)
    for o, r in zip(outs, refs):
        assert o.shape == r.shape
        assert jnp.allclose(o, r, atol=1e-5, rtol=1e-5)

    # Config 2: batch 16 -> two batch chunks on the "parallel" grid axis (v7x megacore path),
    # default (auto) time-chunk sizing.
    T2, B2 = 12, 16
    x2 = jax.random.normal(kx2, (T2, B2, in_dim), jnp.float32)
    outs2 = snn_forward(x2, w1, b1, w2, b2, alpha=alpha, beta=beta, threshold=threshold)
    outs2 = [jax.block_until_ready(o) for o in outs2]
    refs2 = snn_reference(x2, w1, b1, w2, b2, alpha=alpha, beta=beta, threshold=threshold)
    for o, r in zip(outs2, refs2):
        assert o.shape == r.shape
        assert jnp.allclose(o, r, atol=1e-5, rtol=1e-5)

    print("KERNEL_OK")
</pallas_src>

<mosaic_0001>
module attributes {stable_mosaic.version = 11 : i64} {
  func.func @_snn_kernel(%arg0: i32, %arg1: i32, %arg2: memref<8x8x32xf32, #tpu.memory_space<vmem>>, %arg3: memref<32x32xf32, #tpu.memory_space<vmem>>, %arg4: memref<1x32xf32, #tpu.memory_space<vmem>>, %arg5: memref<32x16xf32, #tpu.memory_space<vmem>>, %arg6: memref<1x16xf32, #tpu.memory_space<vmem>>, %arg7: memref<8x8x128xf32, #tpu.memory_space<vmem>>, %arg8: memref<64x32xf32, #tpu.memory_space<vmem>>, %arg9: memref<8x32xf32, #tpu.memory_space<vmem>>, %arg10: memref<8x32xf32, #tpu.memory_space<vmem>>, %arg11: memref<8x32xf32, #tpu.memory_space<vmem>>, %arg12: memref<8x16xf32, #tpu.memory_space<vmem>>, %arg13: memref<8x16xf32, #tpu.memory_space<vmem>>, %arg14: memref<8x16xf32, #tpu.memory_space<vmem>>) attributes {dimension_semantics = [#tpu.dimension_semantics<parallel>, #tpu.dimension_semantics<arbitrary>], iteration_bounds = array<i64: 1, 3>, scalar_prefetch = 0 : i64, scratch_operands = 7 : i64, tpu.core_type = #tpu.core_type<tc>, window_params = [{transform_indices = @transform_0, window_bounds = array<i64: 8, 8, 32>}, {pipeline_mode = #tpu.pipeline_mode<synchronous>, transform_indices = @transform_1, window_bounds = array<i64: 32, 32>}, {pipeline_mode = #tpu.pipeline_mode<synchronous>, transform_indices = @transform_2, window_bounds = array<i64: 1, 32>}, {pipeline_mode = #tpu.pipeline_mode<synchronous>, transform_indices = @transform_3, window_bounds = array<i64: 32, 16>}, {pipeline_mode = #tpu.pipeline_mode<synchronous>, transform_indices = @transform_4, window_bounds = array<i64: 1, 16>}, {transform_indices = @transform_5, window_bounds = array<i64: 8, 8, 128>}]} {
    %c0_i32 = arith.constant 0 : i32
    %0 = arith.cmpi eq, %arg1, %c0_i32 : i32
    %1 = arith.extui %0 : i1 to i32
    %c0_i32_0 = arith.constant 0 : i32
    %2 = arith.cmpi ne, %1, %c0_i32_0 : i32
    scf.if %2 {
      %cst_112 = arith.constant 0.000000e+00 : f32
      %324 = vector.broadcast %cst_112 : f32 to vector<8x32xf32>
      %c0_113 = arith.constant 0 : index
      %c0_114 = arith.constant 0 : index
      %325 = vector.load %arg9[%c0_113, %c0_114] : memref<8x32xf32, #tpu.memory_space<vmem>>, vector<8x32xf32>
      tpu.vector_store %arg9[%c0_113, %c0_114], %324 {strides = array<i32>} : memref<8x32xf32, #tpu.memory_space<vmem>>, vector<8x32xf32>,
      %cst_115 = arith.constant 0.000000e+00 : f32
      %326 = vector.broadcast %cst_115 : f32 to vector<8x32xf32>
      %c0_116 = arith.constant 0 : index
      %c0_117 = arith.constant 0 : index
      %327 = vector.load %arg10[%c0_116, %c0_117] : memref<8x32xf32, #tpu.memory_space<vmem>>, vector<8x32xf32>
      tpu.vector_store %arg10[%c0_116, %c0_117], %326 {strides = array<i32>} : memref<8x32xf32, #tpu.memory_space<vmem>>, vector<8x32xf32>,
      %cst_118 = arith.constant 0.000000e+00 : f32
      %328 = vector.broadcast %cst_118 : f32 to vector<8x32xf32>
      %c0_119 = arith.constant 0 : index
      %c0_120 = arith.constant 0 : index
      %329 = vector.load %arg11[%c0_119, %c0_120] : memref<8x32xf32, #tpu.memory_space<vmem>>, vector<8x32xf32>
      tpu.vector_store %arg11[%c0_119, %c0_120], %328 {strides = array<i32>} : memref<8x32xf32, #tpu.memory_space<vmem>>, vector<8x32xf32>,
      %cst_121 = arith.constant 0.000000e+00 : f32
      %330 = vector.broadcast %cst_121 : f32 to vector<8x16xf32>
      %c0_122 = arith.constant 0 : index
      %c0_123 = arith.constant 0 : index
      %331 = vector.load %arg12[%c0_122, %c0_123] : memref<8x16xf32, #tpu.memory_space<vmem>>, vector<8x16xf32>
      tpu.vector_store %arg12[%c0_122, %c0_123], %330 {strides = array<i32>} : memref<8x16xf32, #tpu.memory_space<vmem>>, vector<8x16xf32>,
      %cst_124 = arith.constant 0.000000e+00 : f32
      %332 = vector.broadcast %cst_124 : f32 to vector<8x16xf32>
      %c0_125 = arith.constant 0 : index
      %c0_126 = arith.constant 0 : index
      %333 = vector.load %arg13[%c0_125, %c0_126] : memref<8x16xf32, #tpu.memory_space<vmem>>, vector<8x16xf32>
      tpu.vector_store %arg13[%c0_125, %c0_126], %332 {strides = array<i32>} : memref<8x16xf32, #tpu.memory_space<vmem>>, vector<8x16xf32>,
      %cst_127 = arith.constant 0.000000e+00 : f32
      %334 = vector.broadcast %cst_127 : f32 to vector<8x16xf32>
      %c0_128 = arith.constant 0 : index
      %c0_129 = arith.constant 0 : index
      %335 = vector.load %arg14[%c0_128, %c0_129] : memref<8x16xf32, #tpu.memory_space<vmem>>, vector<8x16xf32>
      tpu.vector_store %arg14[%c0_128, %c0_129], %334 {strides = array<i32>} : memref<8x16xf32, #tpu.memory_space<vmem>>, vector<8x16xf32>,
    } else {
    }
    %c0 = arith.constant 0 : index
    %c0_1 = arith.constant 0 : index
    %c0_2 = arith.constant 0 : index
    %3 = vector.load %arg2[%c0, %c0_1, %c0_2] : memref<8x8x32xf32, #tpu.memory_space<vmem>>, vector<8x8x32xf32>
    %4 = vector.shape_cast %3 : vector<8x8x32xf32> to vector<64x32xf32>
    %c0_3 = arith.constant 0 : index
    %c0_4 = arith.constant 0 : index
    %5 = vector.load %arg3[%c0_3, %c0_4] : memref<32x32xf32, #tpu.memory_space<vmem>>, vector<32x32xf32>
    %cst = arith.constant dense<0.000000e+00> : vector<64x32xf32>
    %6 = tpu.matmul %4, %5, %cst {dimension_numbers = #tpu.dot_dimension_numbers<[1], [0], [0], [1], [0, 0, 1, 1], [], []>} : vector<64x32xf32>, vector<32x32xf32>, vector<64x32xf32> -> vector<64x32xf32>
    %c0_5 = arith.constant 0 : index
    %c0_6 = arith.constant 0 : index
    %7 = vector.load %arg4[%c0_5, %c0_6] : memref<1x32xf32, #tpu.memory_space<vmem>>, vector<1x32xf32>
    %8 = vector.broadcast %7 : vector<1x32xf32> to vector<64x32xf32>
    %9 = arith.addf %6, %8 : vector<64x32xf32>
    %c0_7 = arith.constant 0 : index
    %c0_8 = arith.constant 0 : index
    %10 = vector.load %arg8[%c0_7, %c0_8] : memref<64x32xf32, #tpu.memory_space<vmem>>, vector<64x32xf32>
    tpu.vector_store %arg8[%c0_7, %c0_8], %9 {strides = array<i32>} : memref<64x32xf32, #tpu.memory_space<vmem>>, vector<64x32xf32>,
    %c0_9 = arith.constant 0 : index
    %c0_10 = arith.constant 0 : index
    %11 = vector.load %arg5[%c0_9, %c0_10] : memref<32x16xf32, #tpu.memory_space<vmem>>, vector<32x16xf32>
    %c0_11 = arith.constant 0 : index
    %c0_12 = arith.constant 0 : index
    %12 = vector.load %arg6[%c0_11, %c0_12] : memref<1x16xf32, #tpu.memory_space<vmem>>, vector<1x16xf32>
    %13 = vector.shape_cast %12 : vector<1x16xf32> to vector<1x16xf32>
    %14 = vector.broadcast %13 : vector<1x16xf32> to vector<8x16xf32>
    %cst_13 = arith.constant 0.000000e+00 : f32
    %15 = vector.broadcast %cst_13 : f32 to vector<8x32xf32>
    %c0_14 = arith.constant 0 : index
    %c0_15 = arith.constant 0 : index
    %16 = vector.load %arg9[%c0_14, %c0_15] : memref<8x32xf32, #tpu.memory_space<vmem>>, vector<8x32xf32>
    %c0_16 = arith.constant 0 : index
    %c0_17 = arith.constant 0 : index
    %17 = vector.load %arg10[%c0_16, %c0_17] : memref<8x32xf32, #tpu.memory_space<vmem>>, vector<8x32xf32>
    %c0_18 = arith.constant 0 : index
    %c0_19 = arith.constant 0 : index
    %18 = vector.load %arg11[%c0_18, %c0_19] : memref<8x32xf32, #tpu.memory_space<vmem>>, vector<8x32xf32>
    %c0_20 = arith.constant 0 : index
    %c0_21 = arith.constant 0 : index
    %19 = vector.load %arg12[%c0_20, %c0_21] : memref<8x16xf32, #tpu.memory_space<vmem>>, vector<8x16xf32>
    %c0_22 = arith.constant 0 : index
    %c0_23 = arith.constant 0 : index
    %20 = vector.load %arg13[%c0_22, %c0_23] : memref<8x16xf32, #tpu.memory_space<vmem>>, vector<8x16xf32>
    %c0_24 = arith.constant 0 : index
    %c0_25 = arith.constant 0 : index
    %21 = vector.load %arg14[%c0_24, %c0_25] : memref<8x16xf32, #tpu.memory_space<vmem>>, vector<8x16xf32>
    %cst_26 = arith.constant 1.000000e+00 : f32
    %c0_i32_27 = arith.constant 0 : i32
    %c8_i32 = arith.constant 8 : i32
    %22 = arith.muli %c0_i32_27, %c8_i32 : i32
    %23 = tpu.assume_multiple %22, 8 : i32
    %24 = arith.index_cast %23 : i32 to index
    %c0_28 = arith.constant 0 : index
    %25 = vector.load %arg8[%24, %c0_28] : memref<64x32xf32, #tpu.memory_space<vmem>>, vector<8x32xf32>
    %cst_29 = arith.constant 0.899999976 : f32
    %26 = vector.broadcast %cst_29 : f32 to vector<8x32xf32>
    %27 = arith.mulf %26, %16 : vector<8x32xf32>
    %28 = arith.addf %27, %25 : vector<8x32xf32>
    %cst_30 = arith.constant 8.000000e-01 : f32
    %29 = vector.broadcast %cst_30 : f32 to vector<8x32xf32>
    %30 = arith.mulf %29, %17 : vector<8x32xf32>
    %31 = arith.addf %30, %28 : vector<8x32xf32>
    %32 = vector.broadcast %cst_26 : f32 to vector<8x32xf32>
    %33 = arith.mulf %18, %32 : vector<8x32xf32>
    %34 = arith.subf %31, %33 : vector<8x32xf32>
    %35 = vector.broadcast %cst_26 : f32 to vector<8x32xf32>
    %36 = arith.cmpf ogt, %34, %35 : vector<8x32xf32>
    %37 = arith.extui %36 : vector<8x32xi1> to vector<8x32xi32>
    %38 = arith.sitofp %37 : vector<8x32xi32> to vector<8x32xf32>
    %cst_31 = arith.constant dense<0.000000e+00> : vector<8x16xf32>
    %39 = tpu.matmul %38, %11, %cst_31 {dimension_numbers = #tpu.dot_dimension_numbers<[1], [0], [0], [1], [0, 0, 1, 1], [], []>} : vector<8x32xf32>, vector<32x16xf32>, vector<8x16xf32> -> vector<8x16xf32>
    %40 = arith.addf %39, %14 : vector<8x16xf32>
    %cst_32 = arith.constant 0.899999976 : f32
    %41 = vector.broadcast %cst_32 : f32 to vector<8x16xf32>
    %42 = arith.mulf %41, %19 : vector<8x16xf32>
    %43 = arith.addf %42, %40 : vector<8x16xf32>
    %cst_33 = arith.constant 8.000000e-01 : f32
    %44 = vector.broadcast %cst_33 : f32 to vector<8x16xf32>
    %45 = arith.mulf %44, %20 : vector<8x16xf32>
    %46 = arith.addf %45, %43 : vector<8x16xf32>
    %47 = vector.broadcast %cst_26 : f32 to vector<8x16xf32>
    %48 = arith.mulf %21, %47 : vector<8x16xf32>
    %49 = arith.subf %46, %48 : vector<8x16xf32>
    %50 = vector.broadcast %cst_26 : f32 to vector<8x16xf32>
    %51 = arith.cmpf ogt, %49, %50 : vector<8x16xf32>
    %52 = arith.extui %51 : vector<8x16xi1> to vector<8x16xi32>
    %53 = arith.sitofp %52 : vector<8x16xi32> to vector<8x16xf32>
    %54 = tpu.concatenate %38, %34, %53, %49, %15 in 1 : vector<8x32xf32>, vector<8x32xf32>, vector<8x16xf32>, vector<8x16xf32>, vector<8x32xf32> -> vector<8x128xf32>
    %55 = arith.index_cast %c0_i32_27 : i32 to index
    %c0_34 = arith.constant 0 : index
    %c0_35 = arith.constant 0 : index
    %56 = vector.load %arg7[%55, %c0_34, %c0_35] : memref<8x8x128xf32, #tpu.memory_space<vmem>>, vector<1x8x128xf32>
    %57 = vector.shape_cast %56 : vector<1x8x128xf32> to vector<8x128xf32>
    %58 = vector.shape_cast %54 : vector<8x128xf32> to vector<1x8x128xf32>
    tpu.vector_store %arg7[%55, %c0_34, %c0_35], %58 {strides = array<i32>} : memref<8x8x128xf32, #tpu.memory_space<vmem>>, vector<1x8x128xf32>,
    %c1_i32 = arith.constant 1 : i32
    %c8_i32_36 = arith.constant 8 : i32
    %59 = arith.muli %c1_i32, %c8_i32_36 : i32
    %60 = tpu.assume_multiple %59, 8 : i32
    %61 = arith.index_cast %60 : i32 to index
    %c0_37 = arith.constant 0 : index
    %62 = vector.load %arg8[%61, %c0_37] : memref<64x32xf32, #tpu.memory_space<vmem>>, vector<8x32xf32>
    %cst_38 = arith.constant 0.899999976 : f32
    %63 = vector.broadcast %cst_38 : f32 to vector<8x32xf32>
    %64 = arith.mulf %63, %28 : vector<8x32xf32>
    %65 = arith.addf %64, %62 : vector<8x32xf32>
    %cst_39 = arith.constant 8.000000e-01 : f32
    %66 = vector.broadcast %cst_39 : f32 to vector<8x32xf32>
    %67 = arith.mulf %66, %34 : vector<8x32xf32>
    %68 = arith.addf %67, %65 : vector<8x32xf32>
    %69 = vector.broadcast %cst_26 : f32 to vector<8x32xf32>
    %70 = arith.mulf %38, %69 : vector<8x32xf32>
    %71 = arith.subf %68, %70 : vector<8x32xf32>
    %72 = vector.broadcast %cst_26 : f32 to vector<8x32xf32>
    %73 = arith.cmpf ogt, %71, %72 : vector<8x32xf32>
    %74 = arith.extui %73 : vector<8x32xi1> to vector<8x32xi32>
    %75 = arith.sitofp %74 : vector<8x32xi32> to vector<8x32xf32>
    %cst_40 = arith.constant dense<0.000000e+00> : vector<8x16xf32>
    %76 = tpu.matmul %75, %11, %cst_40 {dimension_numbers = #tpu.dot_dimension_numbers<[1], [0], [0], [1], [0, 0, 1, 1], [], []>} : vector<8x32xf32>, vector<32x16xf32>, vector<8x16xf32> -> vector<8x16xf32>
    %77 = arith.addf %76, %14 : vector<8x16xf32>
    %cst_41 = arith.constant 0.899999976 : f32
    %78 = vector.broadcast %cst_41 : f32 to vector<8x16xf32>
    %79 = arith.mulf %78, %43 : vector<8x16xf32>
    %80 = arith.addf %79, %77 : vector<8x16xf32>
    %cst_42 = arith.constant 8.000000e-01 : f32
    %81 = vector.broadcast %cst_42 : f32 to vector<8x16xf32>
    %82 = arith.mulf %81, %49 : vector<8x16xf32>
    %83 = arith.addf %82, %80 : vector<8x16xf32>
    %84 = vector.broadcast %cst_26 : f32 to vector<8x16xf32>
    %85 = arith.mulf %53, %84 : vector<8x16xf32>
    %86 = arith.subf %83, %85 : vector<8x16xf32>
    %87 = vector.broadcast %cst_26 : f32 to vector<8x16xf32>
    %88 = arith.cmpf ogt, %86, %87 : vector<8x16xf32>
    %89 = arith.extui %88 : vector<8x16xi1> to vector<8x16xi32>
    %90 = arith.sitofp %89 : vector<8x16xi32> to vector<8x16xf32>
    %91 = tpu.concatenate %75, %71, %90, %86, %15 in 1 : vector<8x32xf32>, vector<8x32xf32>, vector<8x16xf32>, vector<8x16xf32>, vector<8x32xf32> -> vector<8x128xf32>
    %92 = arith.index_cast %c1_i32 : i32 to index
    %c0_43 = arith.constant 0 : index
    %c0_44 = arith.constant 0 : index
    %93 = vector.load %arg7[%92, %c0_43, %c0_44] : memref<8x8x128xf32, #tpu.memory_space<vmem>>, vector<1x8x128xf32>
    %94 = vector.shape_cast %93 : vector<1x8x128xf32> to vector<8x128xf32>
    %95 = vector.shape_cast %91 : vector<8x128xf32> to vector<1x8x128xf32>
    tpu.vector_store %arg7[%92, %c0_43, %c0_44], %95 {strides = array<i32>} : memref<8x8x128xf32, #tpu.memory_space<vmem>>, vector<1x8x128xf32>,
    %c2_i32 = arith.constant 2 : i32
    %c8_i32_45 = arith.constant 8 : i32
    %96 = arith.muli %c2_i32, %c8_i32_45 : i32
    %97 = tpu.assume_multiple %96, 8 : i32
    %98 = arith.index_cast %97 : i32 to index
    %c0_46 = arith.constant 0 : index
    %99 = vector.load %arg8[%98, %c0_46] : memref<64x32xf32, #tpu.memory_space<vmem>>, vector<8x32xf32>
    %cst_47 = arith.constant 0.899999976 : f32
    %100 = vector.broadcast %cst_47 : f32 to vector<8x32xf32>
    %101 = arith.mulf %100, %65 : vector<8x32xf32>
    %102 = arith.addf %101, %99 : vector<8x32xf32>
    %cst_48 = arith.constant 8.000000e-01 : f32
    %103 = vector.broadcast %cst_48 : f32 to vector<8x32xf32>
    %104 = arith.mulf %103, %71 : vector<8x32xf32>
    %105 = arith.addf %104, %102 : vector<8x32xf32>
    %106 = vector.broadcast %cst_26 : f32 to vector<8x32xf32>
    %107 = arith.mulf %75, %106 : vector<8x32xf32>
    %108 = arith.subf %105, %107 : vector<8x32xf32>
    %109 = vector.broadcast %cst_26 : f32 to vector<8x32xf32>
    %110 = arith.cmpf ogt, %108, %109 : vector<8x32xf32>
    %111 = arith.extui %110 : vector<8x32xi1> to vector<8x32xi32>
    %112 = arith.sitofp %111 : vector<8x32xi32> to vector<8x32xf32>
    %cst_49 = arith.constant dense<0.000000e+00> : vector<8x16xf32>
    %113 = tpu.matmul %112, %11, %cst_49 {dimension_numbers = #tpu.dot_dimension_numbers<[1], [0], [0], [1], [0, 0, 1, 1], [], []>} : vector<8x32xf32>, vector<32x16xf32>, vector<8x16xf32> -> vector<8x16xf32>
    %114 = arith.addf %113, %14 : vector<8x16xf32>
    %cst_50 = arith.constant 0.899999976 : f32
    %115 = vector.broadcast %cst_50 : f32 to vector<8x16xf32>
    %116 = arith.mulf %115, %80 : vector<8x16xf32>
    %117 = arith.addf %116, %114 : vector<8x16xf32>
    %cst_51 = arith.constant 8.000000e-01 : f32
    %118 = vector.broadcast %cst_51 : f32 to vector<8x16xf32>
    %119 = arith.mulf %118, %86 : vector<8x16xf32>
    %120 = arith.addf %119, %117 : vector<8x16xf32>
    %121 = vector.broadcast %cst_26 : f32 to vector<8x16xf32>
    %122 = arith.mulf %90, %121 : vector<8x16xf32>
    %123 = arith.subf %120, %122 : vector<8x16xf32>
    %124 = vector.broadcast %cst_26 : f32 to vector<8x16xf32>
    %125 = arith.cmpf ogt, %123, %124 : vector<8x16xf32>
    %126 = arith.extui %125 : vector<8x16xi1> to vector<8x16xi32>
    %127 = arith.sitofp %126 : vector<8x16xi32> to vector<8x16xf32>
    %128 = tpu.concatenate %112, %108, %127, %123, %15 in 1 : vector<8x32xf32>, vector<8x32xf32>, vector<8x16xf32>, vector<8x16xf32>, vector<8x32xf32> -> vector<8x128xf32>
    %129 = arith.index_cast %c2_i32 : i32 to index
    %c0_52 = arith.constant 0 : index
    %c0_53 = arith.constant 0 : index
    %130 = vector.load %arg7[%129, %c0_52, %c0_53] : memref<8x8x128xf32, #tpu.memory_space<vmem>>, vector<1x8x128xf32>
    %131 = vector.shape_cast %130 : vector<1x8x128xf32> to vector<8x128xf32>
    %132 = vector.shape_cast %128 : vector<8x128xf32> to vector<1x8x128xf32>
    tpu.vector_store %arg7[%129, %c0_52, %c0_53], %132 {strides = array<i32>} : memref<8x8x128xf32, #tpu.memory_space<vmem>>, vector<1x8x128xf32>,
    %c3_i32 = arith.constant 3 : i32
    %c8_i32_54 = arith.constant 8 : i32
    %133 = arith.muli %c3_i32, %c8_i32_54 : i32
    %134 = tpu.assume_multiple %133, 8 : i32
    %135 = arith.index_cast %134 : i32 to index
    %c0_55 = arith.constant 0 : index
    %136 = vector.load %arg8[%135, %c0_55] : memref<64x32xf32, #tpu.memory_space<vmem>>, vector<8x32xf32>
    %cst_56 = arith.constant 0.899999976 : f32
    %137 = vector.broadcast %cst_56 : f32 to vector<8x32xf32>
    %138 = arith.mulf %137, %102 : vector<8x32xf32>
    %139 = arith.addf %138, %136 : vector<8x32xf32>
    %cst_57 = arith.constant 8.000000e-01 : f32
    %140 = vector.broadcast %cst_57 : f32 to vector<8x32xf32>
    %141 = arith.mulf %140, %108 : vector<8x32xf32>
    %142 = arith.addf %141, %139 : vector<8x32xf32>
    %143 = vector.broadcast %cst_26 : f32 to vector<8x32xf32>
    %144 = arith.mulf %112, %143 : vector<8x32xf32>
    %145 = arith.subf %142, %144 : vector<8x32xf32>
    %146 = vector.broadcast %cst_26 : f32 to vector<8x32xf32>
    %147 = arith.cmpf ogt, %145, %146 : vector<8x32xf32>
    %148 = arith.extui %147 : vector<8x32xi1> to vector<8x32xi32>
    %149 = arith.sitofp %148 : vector<8x32xi32> to vector<8x32xf32>
    %cst_58 = arith.constant dense<0.000000e+00> : vector<8x16xf32>
    %150 = tpu.matmul %149, %11, %cst_58 {dimension_numbers = #tpu.dot_dimension_numbers<[1], [0], [0], [1], [0, 0, 1, 1], [], []>} : vector<8x32xf32>, vector<32x16xf32>, vector<8x16xf32> -> vector<8x16xf32>
    %151 = arith.addf %150, %14 : vector<8x16xf32>
    %cst_59 = arith.constant 0.899999976 : f32
    %152 = vector.broadcast %cst_59 : f32 to vector<8x16xf32>
    %153 = arith.mulf %152, %117 : vector<8x16xf32>
    %154 = arith.addf %153, %151 : vector<8x16xf32>
    %cst_60 = arith.constant 8.000000e-01 : f32
    %155 = vector.broadcast %cst_60 : f32 to vector<8x16xf32>
    %156 = arith.mulf %155, %123 : vector<8x16xf32>
    %157 = arith.addf %156, %154 : vector<8x16xf32>
    %158 = vector.broadcast %cst_26 : f32 to vector<8x16xf32>
    %159 = arith.mulf %127, %158 : vector<8x16xf32>
    %160 = arith.subf %157, %159 : vector<8x16xf32>
    %161 = vector.broadcast %cst_26 : f32 to vector<8x16xf32>
    %162 = arith.cmpf ogt, %160, %161 : vector<8x16xf32>
    %163 = arith.extui %162 : vector<8x16xi1> to vector<8x16xi32>
    %164 = arith.sitofp %163 : vector<8x16xi32> to vector<8x16xf32>
    %165 = tpu.concatenate %149, %145, %164, %160, %15 in 1 : vector<8x32xf32>, vector<8x32xf32>, vector<8x16xf32>, vector<8x16xf32>, vector<8x32xf32> -> vector<8x128xf32>
    %166 = arith.index_cast %c3_i32 : i32 to index
    %c0_61 = arith.constant 0 : index
    %c0_62 = arith.constant 0 : index
    %167 = vector.load %arg7[%166, %c0_61, %c0_62] : memref<8x8x128xf32, #tpu.memory_space<vmem>>, vector<1x8x128xf32>
    %168 = vector.shape_cast %167 : vector<1x8x128xf32> to vector<8x128xf32>
    %169 = vector.shape_cast %165 : vector<8x128xf32> to vector<1x8x128xf32>
    tpu.vector_store %arg7[%166, %c0_61, %c0_62], %169 {strides = array<i32>} : memref<8x8x128xf32, #tpu.memory_space<vmem>>, vector<1x8x128xf32>,
    %c4_i32 = arith.constant 4 : i32
    %c8_i32_63 = arith.constant 8 : i32
    %170 = arith.muli %c4_i32, %c8_i32_63 : i32
    %171 = tpu.assume_multiple %170, 8 : i32
    %172 = arith.index_cast %171 : i32 to index
    %c0_64 = arith.constant 0 : index
    %173 = vector.load %arg8[%172, %c0_64] : memref<64x32xf32, #tpu.memory_space<vmem>>, vector<8x32xf32>
    %cst_65 = arith.constant 0.899999976 : f32
    %174 = vector.broadcast %cst_65 : f32 to vector<8x32xf32>
    %175 = arith.mulf %174, %139 : vector<8x32xf32>
    %176 = arith.addf %175, %173 : vector<8x32xf32>
    %cst_66 = arith.constant 8.000000e-01 : f32
    %177 = vector.broadcast %cst_66 : f32 to vector<8x32xf32>
    %178 = arith.mulf %177, %145 : vector<8x32xf32>
    %179 = arith.addf %178, %176 : vector<8x32xf32>
    %180 = vector.broadcast %cst_26 : f32 to vector<8x32xf32>
    %181 = arith.mulf %149, %180 : vector<8x32xf32>
    %182 = arith.subf %179, %181 : vector<8x32xf32>
    %183 = vector.broadcast %cst_26 : f32 to vector<8x32xf32>
    %184 = arith.cmpf ogt, %182, %183 : vector<8x32xf32>
    %185 = arith.extui %184 : vector<8x32xi1> to vector<8x32xi32>
    %186 = arith.sitofp %185 : vector<8x32xi32> to vector<8x32xf32>
    %cst_67 = arith.constant dense<0.000000e+00> : vector<8x16xf32>
    %187 = tpu.matmul %186, %11, %cst_67 {dimension_numbers = #tpu.dot_dimension_numbers<[1], [0], [0], [1], [0, 0, 1, 1], [], []>} : vector<8x32xf32>, vector<32x16xf32>, vector<8x16xf32> -> vector<8x16xf32>
    %188 = arith.addf %187, %14 : vector<8x16xf32>
    %cst_68 = arith.constant 0.899999976 : f32
    %189 = vector.broadcast %cst_68 : f32 to vector<8x16xf32>
    %190 = arith.mulf %189, %154 : vector<8x16xf32>
    %191 = arith.addf %190, %188 : vector<8x16xf32>
    %cst_69 = arith.constant 8.000000e-01 : f32
    %192 = vector.broadcast %cst_69 : f32 to vector<8x16xf32>
    %193 = arith.mulf %192, %160 : vector<8x16xf32>
    %194 = arith.addf %193, %191 : vector<8x16xf32>
    %195 = vector.broadcast %cst_26 : f32 to vector<8x16xf32>
    %196 = arith.mulf %164, %195 : vector<8x16xf32>
    %197 = arith.subf %194, %196 : vector<8x16xf32>
    %198 = vector.broadcast %cst_26 : f32 to vector<8x16xf32>
    %199 = arith.cmpf ogt, %197, %198 : vector<8x16xf32>
    %200 = arith.extui %199 : vector<8x16xi1> to vector<8x16xi32>
    %201 = arith.sitofp %200 : vector<8x16xi32> to vector<8x16xf32>
    %202 = tpu.concatenate %186, %182, %201, %197, %15 in 1 : vector<8x32xf32>, vector<8x32xf32>, vector<8x16xf32>, vector<8x16xf32>, vector<8x32xf32> -> vector<8x128xf32>
    %203 = arith.index_cast %c4_i32 : i32 to index
    %c0_70 = arith.constant 0 : index
    %c0_71 = arith.constant 0 : index
    %204 = vector.load %arg7[%203, %c0_70, %c0_71] : memref<8x8x128xf32, #tpu.memory_space<vmem>>, vector<1x8x128xf32>
    %205 = vector.shape_cast %204 : vector<1x8x128xf32> to vector<8x128xf32>
    %206 = vector.shape_cast %202 : vector<8x128xf32> to vector<1x8x128xf32>
    tpu.vector_store %arg7[%203, %c0_70, %c0_71], %206 {strides = array<i32>} : memref<8x8x128xf32, #tpu.memory_space<vmem>>, vector<1x8x128xf32>,
    %c5_i32 = arith.constant 5 : i32
    %c8_i32_72 = arith.constant 8 : i32
    %207 = arith.muli %c5_i32, %c8_i32_72 : i32
    %208 = tpu.assume_multiple %207, 8 : i32
    %209 = arith.index_cast %208 : i32 to index
    %c0_73 = arith.constant 0 : index
    %210 = vector.load %arg8[%209, %c0_73] : memref<64x32xf32, #tpu.memory_space<vmem>>, vector<8x32xf32>
    %cst_74 = arith.constant 0.899999976 : f32
    %211 = vector.broadcast %cst_74 : f32 to vector<8x32xf32>
    %212 = arith.mulf %211, %176 : vector<8x32xf32>
    %213 = arith.addf %212, %210 : vector<8x32xf32>
    %cst_75 = arith.constant 8.000000e-01 : f32
    %214 = vector.broadcast %cst_75 : f32 to vector<8x32xf32>
    %215 = arith.mulf %214, %182 : vector<8x32xf32>
    %216 = arith.addf %215, %213 : vector<8x32xf32>
    %217 = vector.broadcast %cst_26 : f32 to vector<8x32xf32>
    %218 = arith.mulf %186, %217 : vector<8x32xf32>
    %219 = arith.subf %216, %218 : vector<8x32xf32>
    %220 = vector.broadcast %cst_26 : f32 to vector<8x32xf32>
    %221 = arith.cmpf ogt, %219, %220 : vector<8x32xf32>
    %222 = arith.extui %221 : vector<8x32xi1> to vector<8x32xi32>
    %223 = arith.sitofp %222 : vector<8x32xi32> to vector<8x32xf32>
    %cst_76 = arith.constant dense<0.000000e+00> : vector<8x16xf32>
    %224 = tpu.matmul %223, %11, %cst_76 {dimension_numbers = #tpu.dot_dimension_numbers<[1], [0], [0], [1], [0, 0, 1, 1], [], []>} : vector<8x32xf32>, vector<32x16xf32>, vector<8x16xf32> -> vector<8x16xf32>
    %225 = arith.addf %224, %14 : vector<8x16xf32>
    %cst_77 = arith.constant 0.899999976 : f32
    %226 = vector.broadcast %cst_77 : f32 to vector<8x16xf32>
    %227 = arith.mulf %226, %191 : vector<8x16xf32>
    %228 = arith.addf %227, %225 : vector<8x16xf32>
    %cst_78 = arith.constant 8.000000e-01 : f32
    %229 = vector.broadcast %cst_78 : f32 to vector<8x16xf32>
    %230 = arith.mulf %229, %197 : vector<8x16xf32>
    %231 = arith.addf %230, %228 : vector<8x16xf32>
    %232 = vector.broadcast %cst_26 : f32 to vector<8x16xf32>
    %233 = arith.mulf %201, %232 : vector<8x16xf32>
    %234 = arith.subf %231, %233 : vector<8x16xf32>
    %235 = vector.broadcast %cst_26 : f32 to vector<8x16xf32>
    %236 = arith.cmpf ogt, %234, %235 : vector<8x16xf32>
    %237 = arith.extui %236 : vector<8x16xi1> to vector<8x16xi32>
    %238 = arith.sitofp %237 : vector<8x16xi32> to vector<8x16xf32>
    %239 = tpu.concatenate %223, %219, %238, %234, %15 in 1 : vector<8x32xf32>, vector<8x32xf32>, vector<8x16xf32>, vector<8x16xf32>, vector<8x32xf32> -> vector<8x128xf32>
    %240 = arith.index_cast %c5_i32 : i32 to index
    %c0_79 = arith.constant 0 : index
    %c0_80 = arith.constant 0 : index
    %241 = vector.load %arg7[%240, %c0_79, %c0_80] : memref<8x8x128xf32, #tpu.memory_space<vmem>>, vector<1x8x128xf32>
    %242 = vector.shape_cast %241 : vector<1x8x128xf32> to vector<8x128xf32>
    %243 = vector.shape_cast %239 : vector<8x128xf32> to vector<1x8x128xf32>
    tpu.vector_store %arg7[%240, %c0_79, %c0_80], %243 {strides = array<i32>} : memref<8x8x128xf32, #tpu.memory_space<vmem>>, vector<1x8x128xf32>,
    %c6_i32 = arith.constant 6 : i32
    %c8_i32_81 = arith.constant 8 : i32
    %244 = arith.muli %c6_i32, %c8_i32_81 : i32
    %245 = tpu.assume_multiple %244, 8 : i32
    %246 = arith.index_cast %245 : i32 to index
    %c0_82 = arith.constant 0 : index
    %247 = vector.load %arg8[%246, %c0_82] : memref<64x32xf32, #tpu.memory_space<vmem>>, vector<8x32xf32>
    %cst_83 = arith.constant 0.899999976 : f32
    %248 = vector.broadcast %cst_83 : f32 to vector<8x32xf32>
    %249 = arith.mulf %248, %213 : vector<8x32xf32>
    %250 = arith.addf %249, %247 : vector<8x32xf32>
    %cst_84 = arith.constant 8.000000e-01 : f32
    %251 = vector.broadcast %cst_84 : f32 to vector<8x32xf32>
    %252 = arith.mulf %251, %219 : vector<8x32xf32>
    %253 = arith.addf %252, %250 : vector<8x32xf32>
    %254 = vector.broadcast %cst_26 : f32 to vector<8x32xf32>
    %255 = arith.mulf %223, %254 : vector<8x32xf32>
    %256 = arith.subf %253, %255 : vector<8x32xf32>
    %257 = vector.broadcast %cst_26 : f32 to vector<8x32xf32>
    %258 = arith.cmpf ogt, %256, %257 : vector<8x32xf32>
    %259 = arith.extui %258 : vector<8x32xi1> to vector<8x32xi32>
    %260 = arith.sitofp %259 : vector<8x32xi32> to vector<8x32xf32>
    %cst_85 = arith.constant dense<0.000000e+00> : vector<8x16xf32>
    %261 = tpu.matmul %260, %11, %cst_85 {dimension_numbers = #tpu.dot_dimension_numbers<[1], [0], [0], [1], [0, 0, 1, 1], [], []>} : vector<8x32xf32>, vector<32x16xf32>, vector<8x16xf32> -> vector<8x16xf32>
    %262 = arith.addf %261, %14 : vector<8x16xf32>
    %cst_86 = arith.constant 0.899999976 : f32
    %263 = vector.broadcast %cst_86 : f32 to vector<8x16xf32>
    %264 = arith.mulf %263, %228 : vector<8x16xf32>
    %265 = arith.addf %264, %262 : vector<8x16xf32>
    %cst_87 = arith.constant 8.000000e-01 : f32
    %266 = vector.broadcast %cst_87 : f32 to vector<8x16xf32>
    %267 = arith.mulf %266, %234 : vector<8x16xf32>
    %268 = arith.addf %267, %265 : vector<8x16xf32>
    %269 = vector.broadcast %cst_26 : f32 to vector<8x16xf32>
    %270 = arith.mulf %238, %269 : vector<8x16xf32>
    %271 = arith.subf %268, %270 : vector<8x16xf32>
    %272 = vector.broadcast %cst_26 : f32 to vector<8x16xf32>
    %273 = arith.cmpf ogt, %271, %272 : vector<8x16xf32>
    %274 = arith.extui %273 : vector<8x16xi1> to vector<8x16xi32>
    %275 = arith.sitofp %274 : vector<8x16xi32> to vector<8x16xf32>
    %276 = tpu.concatenate %260, %256, %275, %271, %15 in 1 : vector<8x32xf32>, vector<8x32xf32>, vector<8x16xf32>, vector<8x16xf32>, vector<8x32xf32> -> vector<8x128xf32>
    %277 = arith.index_cast %c6_i32 : i32 to index
    %c0_88 = arith.constant 0 : index
    %c0_89 = arith.constant 0 : index
    %278 = vector.load %arg7[%277, %c0_88, %c0_89] : memref<8x8x128xf32, #tpu.memory_space<vmem>>, vector<1x8x128xf32>
    %279 = vector.shape_cast %278 : vector<1x8x128xf32> to vector<8x128xf32>
    %280 = vector.shape_cast %276 : vector<8x128xf32> to vector<1x8x128xf32>
    tpu.vector_store %arg7[%277, %c0_88, %c0_89], %280 {strides = array<i32>} : memref<8x8x128xf32, #tpu.memory_space<vmem>>, vector<1x8x128xf32>,
    %c7_i32 = arith.constant 7 : i32
    %c8_i32_90 = arith.constant 8 : i32
    %281 = arith.muli %c7_i32, %c8_i32_90 : i32
    %282 = tpu.assume_multiple %281, 8 : i32
    %283 = arith.index_cast %282 : i32 to index
    %c0_91 = arith.constant 0 : index
    %284 = vector.load %arg8[%283, %c0_91] : memref<64x32xf32, #tpu.memory_space<vmem>>, vector<8x32xf32>
    %cst_92 = arith.constant 0.899999976 : f32
    %285 = vector.broadcast %cst_92 : f32 to vector<8x32xf32>
    %286 = arith.mulf %285, %250 : vector<8x32xf32>
    %287 = arith.addf %286, %284 : vector<8x32xf32>
    %cst_93 = arith.constant 8.000000e-01 : f32
    %288 = vector.broadcast %cst_93 : f32 to vector<8x32xf32>
    %289 = arith.mulf %288, %256 : vector<8x32xf32>
    %290 = arith.addf %289, %287 : vector<8x32xf32>
    %291 = vector.broadcast %cst_26 : f32 to vector<8x32xf32>
    %292 = arith.mulf %260, %291 : vector<8x32xf32>
    %293 = arith.subf %290, %292 : vector<8x32xf32>
    %294 = vector.broadcast %cst_26 : f32 to vector<8x32xf32>
    %295 = arith.cmpf ogt, %293, %294 : vector<8x32xf32>
    %296 = arith.extui %295 : vector<8x32xi1> to vector<8x32xi32>
    %297 = arith.sitofp %296 : vector<8x32xi32> to vector<8x32xf32>
    %cst_94 = arith.constant dense<0.000000e+00> : vector<8x16xf32>
    %298 = tpu.matmul %297, %11, %cst_94 {dimension_numbers = #tpu.dot_dimension_numbers<[1], [0], [0], [1], [0, 0, 1, 1], [], []>} : vector<8x32xf32>, vector<32x16xf32>, vector<8x16xf32> -> vector<8x16xf32>
    %299 = arith.addf %298, %14 : vector<8x16xf32>
    %cst_95 = arith.constant 0.899999976 : f32
    %300 = vector.broadcast %cst_95 : f32 to vector<8x16xf32>
    %301 = arith.mulf %300, %265 : vector<8x16xf32>
    %302 = arith.addf %301, %299 : vector<8x16xf32>
    %cst_96 = arith.constant 8.000000e-01 : f32
    %303 = vector.broadcast %cst_96 : f32 to vector<8x16xf32>
    %304 = arith.mulf %303, %271 : vector<8x16xf32>
    %305 = arith.addf %304, %302 : vector<8x16xf32>
    %306 = vector.broadcast %cst_26 : f32 to vector<8x16xf32>
    %307 = arith.mulf %275, %306 : vector<8x16xf32>
    %308 = arith.subf %305, %307 : vector<8x16xf32>
    %309 = vector.broadcast %cst_26 : f32 to vector<8x16xf32>
    %310 = arith.cmpf ogt, %308, %309 : vector<8x16xf32>
    %311 = arith.extui %310 : vector<8x16xi1> to vector<8x16xi32>
    %312 = arith.sitofp %311 : vector<8x16xi32> to vector<8x16xf32>
    %313 = tpu.concatenate %297, %293, %312, %308, %15 in 1 : vector<8x32xf32>, vector<8x32xf32>, vector<8x16xf32>, vector<8x16xf32>, vector<8x32xf32> -> vector<8x128xf32>
    %314 = arith.index_cast %c7_i32 : i32 to index
    %c0_97 = arith.constant 0 : index
    %c0_98 = arith.constant 0 : index
    %315 = vector.load %arg7[%314, %c0_97, %c0_98] : memref<8x8x128xf32, #tpu.memory_space<vmem>>, vector<1x8x128xf32>
    %316 = vector.shape_cast %315 : vector<1x8x128xf32> to vector<8x128xf32>
    %317 = vector.shape_cast %313 : vector<8x128xf32> to vector<1x8x128xf32>
    tpu.vector_store %arg7[%314, %c0_97, %c0_98], %317 {strides = array<i32>} : memref<8x8x128xf32, #tpu.memory_space<vmem>>, vector<1x8x128xf32>,
    %c8_i32_99 = arith.constant 8 : i32
    %c0_100 = arith.constant 0 : index
    %c0_101 = arith.constant 0 : index
    %318 = vector.load %arg9[%c0_100, %c0_101] : memref<8x32xf32, #tpu.memory_space<vmem>>, vector<8x32xf32>
    tpu.vector_store %arg9[%c0_100, %c0_101], %287 {strides = array<i32>} : memref<8x32xf32, #tpu.memory_space<vmem>>, vector<8x32xf32>,
    %c0_102 = arith.constant 0 : index
    %c0_103 = arith.constant 0 : index
    %319 = vector.load %arg10[%c0_102, %c0_103] : memref<8x32xf32, #tpu.memory_space<vmem>>, vector<8x32xf32>
    tpu.vector_store %arg10[%c0_102, %c0_103], %293 {strides = array<i32>} : memref<8x32xf32, #tpu.memory_space<vmem>>, vector<8x32xf32>,
    %c0_104 = arith.constant 0 : index
    %c0_105 = arith.constant 0 : index
    %320 = vector.load %arg11[%c0_104, %c0_105] : memref<8x32xf32, #tpu.memory_space<vmem>>, vector<8x32xf32>
    tpu.vector_store %arg11[%c0_104, %c0_105], %297 {strides = array<i32>} : memref<8x32xf32, #tpu.memory_space<vmem>>, vector<8x32xf32>,
    %c0_106 = arith.constant 0 : index
    %c0_107 = arith.constant 0 : index
    %321 = vector.load %arg12[%c0_106, %c0_107] : memref<8x16xf32, #tpu.memory_space<vmem>>, vector<8x16xf32>
    tpu.vector_store %arg12[%c0_106, %c0_107], %302 {strides = array<i32>} : memref<8x16xf32, #tpu.memory_space<vmem>>, vector<8x16xf32>,
    %c0_108 = arith.constant 0 : index
    %c0_109 = arith.constant 0 : index
    %322 = vector.load %arg13[%c0_108, %c0_109] : memref<8x16xf32, #tpu.memory_space<vmem>>, vector<8x16xf32>
    tpu.vector_store %arg13[%c0_108, %c0_109], %308 {strides = array<i32>} : memref<8x16xf32, #tpu.memory_space<vmem>>, vector<8x16xf32>,
    %c0_110 = arith.constant 0 : index
    %c0_111 = arith.constant 0 : index
    %323 = vector.load %arg14[%c0_110, %c0_111] : memref<8x16xf32, #tpu.memory_space<vmem>>, vector<8x16xf32>
    tpu.vector_store %arg14[%c0_110, %c0_111], %312 {strides = array<i32>} : memref<8x16xf32, #tpu.memory_space<vmem>>, vector<8x16xf32>,
    return
  }
  func.func @transform_0(%arg0: i32, %arg1: i32) -> (i32, i32, i32) {
    %c0_i32 = arith.constant 0 : i32
    %c0_i32_0 = arith.constant 0 : i32
    return %arg1, %arg0, %c0_i32 : i32, i32, i32
  }
  func.func @transform_1(%arg0: i32, %arg1: i32) -> (i32, i32) {
    %c0_i32 = arith.constant 0 : i32
    %c0_i32_0 = arith.constant 0 : i32
    %c0_i32_1 = arith.constant 0 : i32
    return %c0_i32, %c0_i32_0 : i32, i32
  }
  func.func @transform_2(%arg0: i32, %arg1: i32) -> (i32, i32) {
    %c0_i32 = arith.constant 0 : i32
    %c0_i32_0 = arith.constant 0 : i32
    %c0_i32_1 = arith.constant 0 : i32
    return %c0_i32, %c0_i32_0 : i32, i32
  }
  func.func @transform_3(%arg0: i32, %arg1: i32) -> (i32, i32) {
    %c0_i32 = arith.constant 0 : i32
    %c0_i32_0 = arith.constant 0 : i32
    %c0_i32_1 = arith.constant 0 : i32
    return %c0_i32, %c0_i32_0 : i32, i32
  }
  func.func @transform_4(%arg0: i32, %arg1: i32) -> (i32, i32) {
    %c0_i32 = arith.constant 0 : i32
    %c0_i32_0 = arith.constant 0 : i32
    %c0_i32_1 = arith.constant 0 : i32
    return %c0_i32, %c0_i32_0 : i32, i32
  }
  func.func @transform_5(%arg0: i32, %arg1: i32) -> (i32, i32, i32) {
    %c0_i32 = arith.constant 0 : i32
    %c0_i32_0 = arith.constant 0 : i32
    return %arg1, %arg0, %c0_i32 : i32, i32, i32
  }
}

</mosaic_0001>

<bundles_post_ra>
// kernel: tpu_custom_call.1
= control target key start
LH: loop header
LB: loop body
LE: loop exit
PB: predicated region body
PF: predicated region fallthrough
CT: control target
= control target key end

     0   :  { %10 = vsyncpa [#allocation10], 0  ;;  %s2375_s0 = inlined_call_operand.hbm [shape: f32[24,8,32], index: 0, kind: input, shape index: {}]   ;;  %s2376_s1 = inlined_call_operand.vmem [shape: f32[32,32], index: 1, kind: input, shape index: {}]   ;;  %s2377_s2 = inlined_call_operand.vmem [shape: f32[1,32], index: 2, kind: input, shape index: {}]   ;;  %s2378_s3 = inlined_call_operand.vmem [shape: f32[32,16], index: 3, kind: input, shape index: {}]   ;;  %s2379_s4 = inlined_call_operand.vmem [shape: f32[1,16], index: 4, kind: input, shape index: {}]   ;;  %s2380_s5 = inlined_call_operand.hbm [shape: f32[24,8,128], index: 5, kind: output, shape index: {}]  }
   0x1   :  { %12 = vsyncpa [#allocation10 + $0x1], 0 }
   0x2   :  { %13 = vsyncpa [#allocation11], 0 }
   0x3   :  { %15 = vsyncpa [#allocation11 + $0x1], 0  ;;  %s1953_s18 = smov 0   ;;  %s1955_s19 = smov 0  }
   0x4   :  { %s1957_s20 = smov 0   ;;  %s1959_s21 = smov 0  }
   0x5   :  { %s1961_s22 = smov 0   ;;  %s1963_s23 = smov 0  }
   0x6 LB: > { %s1428_s24 = sadd.s32 4294967295, %s1908_s23   ;;  %s1429_s25 = sadd.s32 4294967294, %s1908_s23   ;;  %s1908_s23 = sphi %s1963_s23, %s21_s23   ;;  %s1904_s22 = sphi %s1961_s22, %s2394_s22   ;;  %s1900_s21 = sphi %s1959_s21, %s2393_s21   ;;  %s1896_s20 = sphi %s1957_s20, %s2392_s20   ;;  %s1892_s19 = sphi %s1955_s19, %s2391_s19   ;;  %s1888_s18 = sphi %s1953_s18, %s2390_s18  }
   0x7   : > { %s30_s26 = sadd.s32 1, %s1904_s22  ;;  %s42_s27 = sadd.s32 1, %s1896_s20 }
   0x8   : > { %p31_p0 = scmp.ge.s32.totalorder %s30_s26, 3  ;;  %p49_p1 = scmp.ne.s32.totalorder %s1896_s20, %s1892_s19 }
   0x9   : > { %p50_p2 = scmp.eq.s32.totalorder %s1908_s23, 0  ;;  %p55_p3 = scmp.ne.s32.totalorder %s1892_s19, %s1888_s18 }
   0xa   : > { %s2396_s26 = smov (%p31_p0, %s30_s26), 0  ;;  %p56_p5 = scmp.eq.s32.totalorder %s1428_s24, 0 }
   0xb   : > { %p1994_p4 = por %p50_p2, %p49_p1  ;;  %s37_s29 = ssub.s32 %s1904_s22, %s2396_s26 }
   0xc   : > { %p165_p6 = scmp.eq.s32.totalorder %s1428_s24, 2  ;;  %p40_p7 = scmp.eq.s32.totalorder %s37_s29, 0 }
   0xd   : > { %p2000_p8 = por %p56_p5, %p55_p3  ;;  %p171_p10 = scmp.eq.s32.totalorder %s1429_s25, 2 }
   0xe   : > { %p2004_p9 = por %p165_p6, %p49_p1  ;;  %p1715_p12 = scmp.lt.s32.totalorder %s1908_s23, 3 }
   0xf   : > { %s2009_s7 = scalar_select %p40_p7, %s1896_s20, %s42_s27  }
  0x10   : > { %s2384_s6 = scalar_select %p2004_p9, 1, 0 }
  0x11   : > { %p2011_p11 = por %p171_p10, %p55_p3  ;;  %s203_s9 = sand.u32 1, %s1896_s20  }
  0x12   : > { %s1432_s10 = sshll.u32 %s203_s9, 6  ;;  %s1485_s11 = sshll.u32 %s1904_s22, 10 }
  0x13   : > { %s2385_s8 = scalar_select %p2011_p11, 1, 0 }
  0x14   : > { %s2021_s14 = scalar_lea.hbm %s2375_s0, %s1485_s11  ;;  %s207_s15 = scalar_lea.vmem [#allocation9], %s1432_s10 }
  0x15   : > { %s215_s16 = sshll.u32 %s207_s15, 4  ;;  %p2027_p13 = pnand %p1715_p12, %p1994_p4  ;;  %s2023_s16 = int_to_ptr.vmem [resolvable:$true] %s215_s16 }
  0x16   : > { %s2032_s24 = scalar_lea.sflag [#allocation10], %s203_s9  ;;  %s1796_s25 = scalar_lea.hbm %s2021_s14, 1024 }
  0x17   : > { %p1797_p1 = scmp.ne.s32.totalorder %s2021_s14, %s1796_s25  ;;  %p1798_p2 = pneg %p2027_p13 }
  0x18   : > { %s1801_s28 = scalar_lea.hbm %s2375_s0, 3072  ;;  %p1802_p4 = scmp.lt.u32.totalorder %s2021_s14, %s2375_s0 }
  0x19   : > { %p1799_p3 = pnand %p1798_p2, %p1797_p1  ;;  %p1803_p6 = scmp.lt.u32.totalorder %s1801_s28, %s1796_s25 }
  0x1a   : > { %p1805_p10 = scmp.lt.u32.totalorder %s1796_s25, %s2021_s14 }
  0x1b   : > { %p1800_p5 = pneg %p1799_p3  ;;  %p1804_p7 = por %p1803_p6, %p1802_p4 }
  0x1d   : > { %p1806_p12 = por %p1805_p10, %p1804_p7 }
  0x1f   : > { %p1807_p0 = pnand %p1806_p12, %p1800_p5 }
  0x21   : > { %1810 = shalt.err (!%p1807_p0)
}
  0x22   : > { %s1811_s9 = scalar_lea.vmem %s2023_s16, 1024  ;;  %s1910_s12 = smov [#allocation9]  }
  0x23   : > { %p1812_p1 = scmp.ne.s32.totalorder %s2023_s16, %s1811_s9  ;;  %s1816_s13 = sshll.u32 %s1910_s12, 4  ;;  %s1817_s13 = int_to_ptr.vmem [resolvable:$false] %s1816_s13 }
  0x24   : > { %s1818_s15 = scalar_lea.vmem %s1817_s13, 2048  ;;  %p1819_p9 = scmp.lt.s32.totalorder %s2023_s16, %s1817_s13 }
  0x25   : > { %p1814_p3 = pnand %p1812_p1, %p1798_p2  ;;  %p1820_p4 = scmp.lt.s32.totalorder %s1818_s15, %s1811_s9 }
  0x27   : > { %p1815_p11 = pneg %p1814_p3  ;;  %p1821_p6 = por %p1820_p4, %p1819_p9 }
  0x29   : > { %p1822_p7 = pnand %p1821_p6, %p1815_p11 }
  0x2b   : > { %1825 = shalt.err (!%p1822_p7)
}
  0x2c   : > { %s1911_s25 = smov 128   ;;  %s1912_s27 = smov 8  }
  0x2d   : > { %1710 = dma.hbm_to_vmem [thread:$0]  (!%p2027_p13), %s2021_s14, 1024, %s2023_s16, %s2032_s24, %s1911_s25, %s1911_s25, %s1912_s27  }
  0x2e   : > { %p223_p0 = scmp.lt.s32.totalorder %s1908_s23, 4  ;;  %p2387_p2 = scmp.ge.s32.totalorder %s1908_s23, 1 }
  0x30   : > { %p224_p5 = pnand %p2387_p2, %p223_p0 }
  0x31   : > { %s2064_s29 = sand.u32 (!%p224_p5), 1, %s1892_s19  }
  0x32   : > { %227 = sbr.rel (%p224_p5) target bundleno = 713 (0x2c9), region = 40  ;;  %s1436_s28 = sshll.u32 (!%p224_p5), %s2064_s29, 6 }
  0x33   : > { %s230_s10 = scalar_lea.sflag (!%p224_p5), [#allocation10], %s2064_s29  ;;  %s2068_s11 = scalar_lea.vmem (!%p224_p5), [#allocation9], %s1436_s28 }
  0x39   : > { %1879 = dma.done.wait (%p2000_p8), %s230_s10, 1024  }
  0x3a   : > { %1881 = vsyncadd (%p2000_p8), %s230_s10, 4294966272  ;;  %s2074_s14 = scalar_lea.vmem [#allocation12], %s1436_s28  ;;  %p1438_p9 = scmp.ne.s32.totalorder %s1900_s21, 0 }
  0x3b   : > { %vm266_vm0 = vcmask (!%p1438_p9), 261120   ;;  %vm270_vm1 = vcmask (!%p1438_p9), 130048   ;;  %v1913_v0 = vmov (!%p1438_p9), 0.0  }
  0x3c   : > { %265 = sbr.rel (%p1438_p9) target bundleno = 67 (0x43), region = 48  ;;  %267 = vst.msk [vmem:[#allocation3] sm:$0xff] (!%p1438_p9), %vm266_vm0, %v1913_v0  ;;  %268 = vst.msk [vmem:[#allocation4] sm:$0xff] (!%p1438_p9), %vm266_vm0, %v1913_v0 }
  0x3d   : > { %269 = vst.msk [vmem:[#allocation5] sm:$0xff] (!%p1438_p9), %vm266_vm0, %v1913_v0 }
  0x3e   : > { %271 = vst.msk [vmem:[#allocation6] sm:$0xff] (!%p1438_p9), %vm270_vm1, %v1913_v0  ;;  %272 = vst.msk [vmem:[#allocation7] sm:$0xff] (!%p1438_p9), %vm270_vm1, %v1913_v0 }
  0x3f   : > { %273 = vst.msk [vmem:[#allocation8] sm:$0xff] (!%p1438_p9), %vm270_vm1, %v1913_v0 }
  0x43 PF: > { %v282_v1 = vld [vmem:[%s2376_s1] sm:$0xff]  ;;  %v283_v2 = vld [vmem:[%s2376_s1 + $0x8] sm:$0xff]  ;;  %v284_v3 = vld [vmem:[%s2376_s1 + $0x10] sm:$0xff]  ;;  %vm293_vm2 = vcmask 261120   ;;  %v1914_v17 = vmov 0.0|0.0   ;;  %vm1915_vm3 = vmmov 0  }
  0x44   : > { %v1647_v4 = vpack.c.bf16 %v283_v2, %v282_v1  ;;  %v285_v5 = vld [vmem:[%s2376_s1 + $0x18] sm:$0xff]  ;;  %v274_v6 = vld [vmem:[%s2068_s11] sm:$0xff]  ;;  %v276_v9 = vld [vmem:[%s2068_s11 + $0x10] sm:$0xff]  ;;  %1655 = vmatprep.subr.bf16.mxu1 %v1914_v17  ;;  %v1916_v22 = vmov 0.0   ;;  %s1917_s12 = smov 32   ;;  %s1918_s25 = smov 80  }
  0x45   : > { %v1651_v7 = vpack.c.bf16 %v285_v5, %v284_v3  ;;  %1547 = vmatprep.mubr.msk.f32.mxu0 %vm293_vm2, %v274_v6  ;;  %v275_v8 = vld [vmem:[%s2068_s11 + $0x8] sm:$0xff]  ;;  %v277_v10 = vld [vmem:[%s2068_s11 + $0x18] sm:$0xff]  ;;  %v278_v11 = vld [vmem:[%s2068_s11 + $0x20] sm:$0xff]  ;;  %1567 = vmatprep.mubr.msk.f32.mxu1 %vm1915_vm3, %v1916_v22  ;;  %s1919_s27 = smov 64   ;;  %s1486_s28 = sshll.u32 %s1900_s21, 10 }
  0x46   : > { %1648 = vmatprep.subr.bf16.mxu0 %v1647_v4  ;;  %v279_v12 = vld [vmem:[%s2068_s11 + $0x28] sm:$0xff]  ;;  %v280_v13 = vld [vmem:[%s2068_s11 + $0x30] sm:$0xff]  ;;  %v281_v14 = vld [vmem:[%s2068_s11 + $0x38] sm:$0xff]  ;;  %s1343_s10 = sshll.u32 %s2074_s14, 4  ;;  %s2320_s21 = scalar_lea.hbm %s2380_s5, %s1486_s28  ;;  %s2322_s10 = int_to_ptr.vmem [resolvable:$true] %s1343_s10 }
  0x47   : > { %1650 = vmatpush3.bf16.msra.mxu0 %v1647_v4  ;;  %v431_v15 = vld [vmem:[%s2378_s3] sm:$0xff]  ;;  %v432_v16 = vld [vmem:[%s2378_s3 + $0x8] sm:$0xff]  ;;  %v433_v19 = vld [vmem:[%s2378_s3 + $0x10] sm:$0xff]  ;;  %s1329_s17 = scalar_lea.sflag [#allocation11], %s2064_s29  ;;  %s1826_s30 = scalar_lea.vmem %s2322_s10, 1024 }
  0x48   : > { %1652 = vmatprep.subr.bf16.mxu0 %v1651_v7  ;;  %v2112_v18 = vpack.c.bf16 %v432_v16, %v431_v15  ;;  %v434_v20 = vld [vmem:[%s2378_s3 + $0x18] sm:$0xff]  ;;  %v1439_v23 = vld [vmem:[%s2377_s2] ss:$0 sm:$0xff]  ;;  %v443_v33 = vld [vmem:[#allocation4] sm:$0xff]  ;;  %p1827_p8 = scmp.ne.s32.totalorder %s2322_s10, %s1826_s30  ;;  %p2388_p11 = scmp.ne.s32.totalorder %s2384_s6, 0 }
  0x49   : > { %v2124_v21 = vpack.c.bf16 %v434_v20, %v433_v19  ;;  %v442_v31 = vld [vmem:[#allocation3] sm:$0xff]  ;;  %v451_v39 = vmul.f32 0.8, %v443_v33  ;;  %v444_v43 = vld [vmem:[#allocation5] sm:$0xff]  ;;  %s1920_s24 = smov [#allocation12]  }
  0x4a   : > { %1657 = vmatpush3.bf16.msra.mxu1 %v2112_v18  ;;  %v449_v35 = vmul.f32 0.9, %v442_v31  ;;  %p1828_p13 = pnand %p1827_p8, %p2388_p11  ;;  %s1830_s9 = sshll.u32 %s1920_s24, 4  ;;  %s1831_s9 = int_to_ptr.vmem [resolvable:$false] %s1830_s9 }
  0x4b   : > { %1654 = vmatpush3.bf16.msra.mxu0 %v1651_v7  ;;  %1658 = vmatprep.subr.bf16.mxu1 %v1914_v17  ;;  %p1833_p12 = scmp.lt.s32.totalorder %s2322_s10, %s1831_s9 }
  0x4c   : > { %1667 = vmatprep.subr.bf16.mxu0 %v1914_v17  ;;  %p1829_p10 = pneg %p1828_p13 }
  0x4e   : > { %1548 = vmatmul.mubr.msk.f32.vlgmr.msra.gmra.mrb[0].mxu0 %vm293_vm2, %v275_v8  ;;  %1660 = vmatpush3.bf16.msra.mxu1 %v2124_v21 }
  0x4f   : > { %1550 = vmatprep.mubr.msk.f32.mxu0 %vm293_vm2, %v276_v9  ;;  %1669 = vmatpush3.bf16.msra.mxu0 %v2112_v18 }
  0x50   : > { %1670 = vmatprep.subr.bf16.mxu0 %v1914_v17  ;;  %1661 = vmatprep.subr.bf16.mxu1 %v1914_v17 }
  0x52   : > { %1551 = vmatmul.mubr.msk.f32.gmra.mrb[2].mxu0 %vm293_vm2, %v277_v10 }
  0x53   : > { %1553 = vmatprep.mubr.msk.f32.mxu0 %vm293_vm2, %v278_v11  ;;  %1672 = vmatpush3.bf16.msra.mxu0 %v2124_v21 }
  0x54   : > { %1679 = vmatprep.subr.bf16.mxu0 %v1914_v17 }
  0x56   : > { %1554 = vmatmul.mubr.msk.f32.gmra.mrb[4].mxu0 %vm293_vm2, %v279_v12 }
  0x57   : > { %1556 = vmatprep.mubr.msk.f32.mxu0 %vm293_vm2, %v280_v13 }
  0x5a   : > { %1557 = vmatmul.mubr.msk.f32.gmra.mrb[6].mxu0 %vm293_vm2, %v281_v14 }
  0x5b   : > { %1589 = vmatprep.mubr.msk.f32.mxu0 %vm1915_vm3, %v1916_v22 }
 0x121   : > { %v1549_v24 = vpop.f32.mrb[0].mxu0 }
 0x122   : > { %v390_v25 = vadd.f32 %v1549_v24, %v1439_v23  ;;  %v384_v26 = vpop.f32.mrb[1].mxu0 }
 0x123   : > { %v385_v27 = vadd.f32 %v1439_v23, %v384_v26 }
 0x124   : > { %424 = vst.msk [vmem:[#allocation2 + $0x8] sm:$0xff] %vm293_vm2, %v390_v25 }
 0x125   : > { %423 = vst.msk [vmem:[#allocation2] sm:$0xff] %vm293_vm2, %v385_v27  ;;  %v1552_v28 = vpop.f32.mrb[2].mxu0 }
 0x126   : > { %v400_v29 = vadd.f32 %v1552_v28, %v1439_v23  ;;  %v394_v30 = vpop.f32.mrb[3].mxu0 }
 0x127   : > { %v395_v32 = vadd.f32 %v1439_v23, %v394_v30 }
 0x128   : > { %426 = vst.msk [vmem:[#allocation2 + $0x18] sm:$0xff] %vm293_vm2, %v400_v29 }
 0x129   : > { %425 = vst.msk [vmem:[#allocation2 + $0x10] sm:$0xff] %vm293_vm2, %v395_v32  ;;  %v1555_v34 = vpop.f32.mrb[4].mxu0 }
 0x12a   : > { %v410_v36 = vadd.f32 %v1555_v34, %v1439_v23  ;;  %v404_v37 = vpop.f32.mrb[5].mxu0 }
 0x12b   : > { %v405_v38 = vadd.f32 %v1439_v23, %v404_v37  ;;  %v559_v49 = vld [vmem:[#allocation2 + $0x8] sm:$0xff]  ;;  %v2242_v37 = vld [vmem:[%s2379_s4] ss:$0 sm:$0xff] }
 0x12c   : > { %428 = vst.msk [vmem:[#allocation2 + $0x28] sm:$0xff] %vm293_vm2, %v410_v36  ;;  %v448_v40 = vld [vmem:[#allocation2] sm:$0xff] }
 0x12d   : > { %427 = vst.msk [vmem:[#allocation2 + $0x20] sm:$0xff] %vm293_vm2, %v405_v38  ;;  %v450_v41 = vadd.f32 %v449_v35, %v448_v40  ;;  %v1558_v42 = vpop.f32.mrb[6].mxu0  ;;  %v446_v38 = vld [vmem:[#allocation7] sm:$0xff] }
 0x12e   : > { %v420_v44 = vadd.f32 %v1558_v42, %v1439_v23  ;;  %v414_v45 = vpop.f32.mrb[7].mxu0  ;;  %v532_v42 = vmul.f32 0.8, %v446_v38 }
 0x12f   : > { %v452_v46 = vadd.f32 %v451_v39, %v450_v41  ;;  %v560_v47 = vmul.f32 0.9, %v450_v41  ;;  %v415_v48 = vadd.f32 %v1439_v23, %v414_v45  ;;  %v777_v58 = vld [vmem:[#allocation2 + $0x18] sm:$0xff]  ;;  %v447_v45 = vld [vmem:[#allocation8] sm:$0xff] }
 0x130   : > { %430 = vst.msk [vmem:[#allocation2 + $0x38] sm:$0xff] %vm293_vm2, %v420_v44  ;;  %v668_v52 = vld [vmem:[#allocation2 + $0x10] sm:$0xff] }
 0x131   : > { %v453_v50 = vsub.f32 %v452_v46, %v444_v43  ;;  %v561_v51 = vadd.f32 %v560_v47, %v559_v49  ;;  %429 = vst.msk [vmem:[#allocation2 + $0x30] sm:$0xff] %vm293_vm2, %v415_v48 }
 0x133   : > { %539 = vrot.lane.b32.xlu0 %v453_v50, %s1917_s12  ;;  %vm454_vm4 = vcmp.gt.f32.partialorder %v453_v50, 1.0  ;;  %v562_v53 = vmul.f32 0.8, %v453_v50  ;;  %v669_v54 = vmul.f32 0.9, %v561_v51  ;;  %v995_v5 = vld [vmem:[#allocation2 + $0x28] sm:$0xff] }
 0x134   : > { %v2148_v55 = vsel %vm454_vm4, 1.0, %v1916_v22  ;;  %v886_v0 = vld [vmem:[#allocation2 + $0x20] sm:$0xff] }
 0x135   : > { %1568 = vmatmul.mubr.msk.f32.vlgmr.msra.gmra.mrb[0].mxu1 %vm293_vm2, %v2148_v55  ;;  %v563_v56 = vadd.f32 %v562_v53, %v561_v51  ;;  %v670_v57 = vadd.f32 %v669_v54, %v668_v52 }
 0x136   : > { %1663 = vmatpush3.bf16.msra.mxu1 %v2112_v18  ;;  %1578 = vmatprep.mubr.msk.f32.mxu1 %vm1915_vm3, %v1916_v22 }
 0x137   : > { %1664 = vmatprep.subr.bf16.mxu1 %v1914_v17  ;;  %v564_v59 = vsub.f32 %v563_v56, %v2148_v55  ;;  %v778_v60 = vmul.f32 0.9, %v670_v57  ;;  %v1213_v19 = vld [vmem:[#allocation2 + $0x38] sm:$0xff] }
 0x138   : > { %v1104_v11 = vld [vmem:[#allocation2 + $0x30] sm:$0xff] }
 0x139   : > { %650 = vrot.lane.b32.xlu0 %v564_v59, %s1917_s12  ;;  %vm565_vm5 = vcmp.gt.f32.partialorder %v564_v59, 1.0  ;;  %v671_v61 = vmul.f32 0.8, %v564_v59  ;;  %v779_v62 = vadd.f32 %v778_v60, %v777_v58 }
 0x13a   : > { %1666 = vmatpush3.bf16.msra.mxu1 %v2124_v21  ;;  %v2160_v63 = vsel %vm565_vm5, 1.0, %v1916_v22 }
 0x13b   : > { %v672_v1 = vadd.f32 %v671_v61, %v670_v57  ;;  %1673 = vmatprep.subr.bf16.mxu1 %v1914_v17  ;;  %v887_v2 = vmul.f32 0.9, %v779_v62 }
 0x13d   : > { %1579 = vmatmul.mubr.msk.f32.vlgmr.msra.gmra.mrb[2].mxu1 %vm293_vm2, %v2160_v63  ;;  %v673_v3 = vsub.f32 %v672_v1, %v2160_v63  ;;  %v888_v4 = vadd.f32 %v887_v2, %v886_v0 }
 0x13e   : > { %1675 = vmatpush3.bf16.msra.mxu1 %v2112_v18  ;;  %1600 = vmatprep.mubr.msk.f32.mxu1 %vm1915_vm3, %v1916_v22 }
 0x13f   : > { %759 = vrot.lane.b32.xlu1 %v673_v3, %s1917_s12  ;;  %vm674_vm6 = vcmp.gt.f32.partialorder %v673_v3, 1.0  ;;  %1676 = vmatprep.subr.bf16.mxu1 %v1914_v17  ;;  %v780_v6 = vmul.f32 0.8, %v673_v3  ;;  %v996_v7 = vmul.f32 0.9, %v888_v4 }
 0x140   : > { %v2172_v8 = vsel %vm674_vm6, 1.0, %v1916_v22  ;;  %vm551_vm6 = vcmask 523264  }
 0x141   : > { %1590 = vmatmul.mubr.msk.f32.vlgmr.msra.gmra.mrb[8].mxu0 %vm293_vm2, %v2172_v8  ;;  %v781_v9 = vadd.f32 %v780_v6, %v779_v62  ;;  %v997_v10 = vadd.f32 %v996_v7, %v995_v5 }
 0x142   : > { %1678 = vmatpush3.bf16.msra.mxu1 %v2124_v21  ;;  %1681 = vmatpush3.bf16.msra.mxu0 %v2112_v18 }
 0x143   : > { %v782_v12 = vsub.f32 %v781_v9, %v2172_v8  ;;  %1682 = vmatprep.subr.bf16.mxu0 %v1914_v17  ;;  %1685 = vmatprep.subr.bf16.mxu1 %v1914_v17  ;;  %v1105_v13 = vmul.f32 0.9, %v997_v10 }
 0x144   : > { %1611 = vmatprep.mubr.msk.f32.mxu0 %vm1915_vm3, %v1916_v22 }
 0x145   : > { %868 = vrot.lane.b32.xlu1 %v782_v12, %s1917_s12  ;;  %vm783_vm7 = vcmp.gt.f32.partialorder %v782_v12, 1.0  ;;  %v889_v14 = vmul.f32 0.8, %v782_v12  ;;  %v1106_v15 = vadd.f32 %v1105_v13, %v1104_v11 }
 0x146   : > { %v2185_v16 = vsel %vm783_vm7, 1.0, %v1916_v22  ;;  %1684 = vmatpush3.bf16.msra.mxu0 %v2124_v21  ;;  %vm553_vm7 = vcmask 654336  }
 0x147   : > { %1601 = vmatmul.mubr.msk.f32.vlgmr.msra.gmra.mrb[4].mxu1 %vm293_vm2, %v2185_v16  ;;  %v890_v20 = vadd.f32 %v889_v14, %v888_v4  ;;  %1691 = vmatprep.subr.bf16.mxu0 %v1914_v17  ;;  %v1214_v23 = vmul.f32 0.9, %v1106_v15 }
 0x148   : > { %1687 = vmatpush3.bf16.msra.mxu1 %v2112_v18  ;;  %1622 = vmatprep.mubr.msk.f32.mxu1 %vm1915_vm3, %v1916_v22 }
 0x149   : > { %v891_v24 = vsub.f32 %v890_v20, %v2185_v16  ;;  %1688 = vmatprep.subr.bf16.mxu1 %v1914_v17  ;;  %v1215_v25 = vadd.f32 %v1214_v23, %v1213_v19 }
 0x14b   : > { %977 = vrot.lane.b32.xlu0 %v891_v24, %s1917_s12  ;;  %vm892_vm8 = vcmp.gt.f32.partialorder %v891_v24, 1.0  ;;  %v998_v26 = vmul.f32 0.8, %v891_v24  ;;  %1321 = vst.msk [vmem:[#allocation3] sm:$0xff] %vm293_vm2, %v1215_v25 }
 0x14c   : > { %v2199_v27 = vsel %vm892_vm8, 1.0, %v1916_v22  ;;  %1690 = vmatpush3.bf16.msra.mxu1 %v2124_v21  ;;  %vm555_vm8 = vcmask 785408  }
 0x14d   : > { %1612 = vmatmul.mubr.msk.f32.vlgmr.msra.gmra.mrb[10].mxu0 %vm293_vm2, %v2199_v27  ;;  %v999_v28 = vadd.f32 %v998_v26, %v997_v10  ;;  %1697 = vmatprep.subr.bf16.mxu1 %v1914_v17 }
 0x14e   : > { %1693 = vmatpush3.bf16.msra.mxu0 %v2112_v18  ;;  %1633 = vmatprep.mubr.msk.f32.mxu0 %vm1915_vm3, %v1916_v22 }
 0x14f   : > { %v1000_v29 = vsub.f32 %v999_v28, %v2199_v27  ;;  %1694 = vmatprep.subr.bf16.mxu0 %v1914_v17 }
 0x151   : > { %1086 = vrot.lane.b32.xlu1 %v1000_v29, %s1917_s12  ;;  %vm1001_vm9 = vcmp.gt.f32.partialorder %v1000_v29, 1.0  ;;  %v1107_v30 = vmul.f32 0.8, %v1000_v29 }
 0x152   : > { %v2212_v31 = vsel %vm1001_vm9, 1.0, %v1916_v22  ;;  %1696 = vmatpush3.bf16.msra.mxu0 %v2124_v21 }
 0x153   : > { %1623 = vmatmul.mubr.msk.f32.vlgmr.msra.gmra.mrb[6].mxu1 %vm293_vm2, %v2212_v31  ;;  %v1108_v32 = vadd.f32 %v1107_v30, %v1106_v15 }
 0x154   : > { %1699 = vmatpush3.bf16.msra.mxu1 %v2112_v18  ;;  %1644 = vmatprep.mubr.msk.f32.mxu1 %vm1915_vm3, %v1916_v22  ;;  %vm1324_vm3 = vcmask 130048  }
 0x155   : > { %v1109_v33 = vsub.f32 %v1108_v32, %v2212_v31  ;;  %1700 = vmatprep.subr.bf16.mxu1 %v1914_v17 }
 0x157   : > { %1195 = vrot.lane.b32.xlu0 %v1109_v33, %s1917_s12  ;;  %vm1110_vm10 = vcmp.gt.f32.partialorder %v1109_v33, 1.0  ;;  %v1216_v34 = vmul.f32 0.8, %v1109_v33 }
 0x158   : > { %v2224_v35 = vsel %vm1110_vm10, 1.0, %v1916_v22  ;;  %1702 = vmatpush3.bf16.msra.mxu1 %v2124_v21  ;;  %v445_v21 = vld [vmem:[#allocation6] sm:$0xff] }
 0x159   : > { %1634 = vmatmul.mubr.msk.f32.vlgmr.msra.gmra.mrb[12].mxu0 %vm293_vm2, %v2224_v35  ;;  %v1217_v18 = vadd.f32 %v1216_v34, %v1215_v25  ;;  %v530_v39 = vmul.f32 0.9, %v445_v21 }
 0x15b   : > { %v1218_v36 = vsub.f32 %v1217_v18, %v2224_v35 }
 0x15d   : > { %1304 = vrot.lane.b32.xlu1 %v1218_v36, %s1917_s12  ;;  %1322 = vst.msk [vmem:[#allocation4] sm:$0xff] %vm293_vm2, %v1218_v36  ;;  %vm1219_vm11 = vcmp.gt.f32.partialorder %v1218_v36, 1.0  ;;  %s1832_s12 = scalar_lea.vmem %s1831_s9, 2048 }
 0x15e   : > { %v2233_v17 = vsel %vm1219_vm11, 1.0, %v1916_v22  ;;  %p1834_p1 = scmp.lt.s32.totalorder %s1832_s12, %s1826_s30 }
 0x15f   : > { %1645 = vmatmul.mubr.msk.f32.vlgmr.msra.gmra.mrb[8].mxu1 %vm293_vm2, %v2233_v17  ;;  %1323 = vst.msk [vmem:[#allocation5] sm:$0xff] %vm293_vm2, %v2233_v17 }
 0x160   : > { %p1835_p3 = por %p1834_p1, %p1833_p12 }
 0x162   : > { %p1836_p4 = pnand %p1835_p3, %p1829_p10 }
 0x208   : > { %v526_v40 = vpop.f32.mrb[0].mxu1 }
 0x209   : > { %v527_v41 = vadd.f32 %v2242_v37, %v526_v40  ;;  %v1569_v43 = vpop.f32.mrb[1].mxu1 }
 0x20b   : > { %v531_v44 = vadd.f32 %v530_v39, %v527_v41 }
 0x20d   : > { %v533_v46 = vadd.f32 %v532_v42, %v531_v44  ;;  %v641_v50 = vmul.f32 0.9, %v531_v44 }
 0x20f   : > { %v534_v47 = vsub.f32 %v533_v46, %v447_v45 }
 0x210   : > { %v637_v48 = vpop.f32.mrb[2].mxu1 }
 0x211   : > { %v638_v49 = vadd.f32 %v2242_v37, %v637_v48  ;;  %v1580_v51 = vpop.f32.mrb[3].mxu1  ;;  %547 = vrot.lane.b32.xlu0 %v534_v47, %s1918_s25  ;;  %v643_v52 = vmul.f32 0.8, %v534_v47  ;;  %vm535_vm12 = vcmp.gt.f32.partialorder %v534_v47, 1.0 }
 0x212   : > { %v1451_v60 = vsel %vm535_vm12, 1.0, %v1916_v22 }
 0x213   : > { %v642_v53 = vadd.f32 %v641_v50, %v638_v49 }
 0x214   : > { %v746_v54 = vpop.f32.mrb[8].mxu0 }
 0x215   : > { %v747_v56 = vadd.f32 %v2242_v37, %v746_v54  ;;  %v750_v57 = vmul.f32 0.9, %v642_v53  ;;  %v1591_v58 = vpop.f32.mrb[9].mxu0  ;;  %v644_v59 = vadd.f32 %v643_v52, %v642_v53 }
 0x217   : > { %v751_v61 = vadd.f32 %v750_v57, %v747_v56  ;;  %v645_v62 = vsub.f32 %v644_v59, %v1451_v60 }
 0x219   : > { %658 = vrot.lane.b32.xlu1 %v645_v62, %s1918_s25  ;;  %vm646_vm13 = vcmp.gt.f32.partialorder %v645_v62, 1.0  ;;  %v752_v0 = vmul.f32 0.8, %v645_v62  ;;  %v859_v4 = vmul.f32 0.9, %v751_v61  ;;  %v540_v62 = vpop.permute.xlu0 %539 }
 0x21a   : > { %v855_v1 = vpop.f32.mrb[4].mxu1  ;;  %v1454_v2 = vsel %vm646_vm13, 1.0, %v1916_v22 }
 0x21b   : > { %v856_v3 = vadd.f32 %v2242_v37, %v855_v1  ;;  %v1602_v5 = vpop.f32.mrb[5].mxu1  ;;  %v1776_v6 = vpack.i.bf16 %v1454_v2, %v1451_v60  ;;  %v753_v7 = vadd.f32 %v752_v0, %v751_v61  ;;  %v760_v1 = vpop.permute.xlu1 %759 }
 0x21d   : > { %v860_v9 = vadd.f32 %v859_v4, %v856_v3  ;;  %1777 = vrot.lane.b32.xlu0 %v1776_v6, %s1919_s27  ;;  %v754_v10 = vsub.f32 %v753_v7, %v1454_v2  ;;  %v651_v0 = vpop.permute.xlu0 %650 }
 0x21f   : > { %vm755_vm14 = vcmp.gt.f32.partialorder %v754_v10, 1.0  ;;  %v861_v11 = vmul.f32 0.8, %v754_v10  ;;  %v968_v14 = vmul.f32 0.9, %v860_v9  ;;  %v869_v3 = vpop.permute.xlu1 %868 }
 0x220   : > { %v964_v12 = vpop.f32.mrb[10].mxu0  ;;  %v1458_v20 = vsel %vm755_vm14, 1.0, %v1916_v22 }
 0x221   : > { %v965_v13 = vadd.f32 %v2242_v37, %v964_v12  ;;  %767 = vrot.lane.b32.xlu0 %v754_v10, %s1918_s25  ;;  %v1613_v15 = vpop.f32.mrb[11].mxu0  ;;  %v862_v19 = vadd.f32 %v861_v11, %v860_v9  ;;  %v978_v2 = vpop.permute.xlu0 %977  ;;  %v550_v11 = vsel %vm293_vm2, %v2148_v55, %v540_v62  ;;  %v661_v12 = vsel %vm293_vm2, %v2160_v63, %v651_v0 }
 0x223   : > { %v969_v23 = vadd.f32 %v968_v14, %v965_v13  ;;  %v863_v24 = vsub.f32 %v862_v19, %v1458_v20  ;;  %v1087_v5 = vpop.permute.xlu1 %1086 }
 0x225   : > { %876 = vrot.lane.b32.xlu1 %v863_v24, %s1918_s25  ;;  %vm864_vm15 = vcmp.gt.f32.partialorder %v863_v24, 1.0  ;;  %v970_v25 = vmul.f32 0.8, %v863_v24  ;;  %v1077_v30 = vmul.f32 0.9, %v969_v23  ;;  %v1196_v4 = vpop.permute.xlu0 %1195 }
 0x226   : > { %v1073_v26 = vpop.f32.mrb[6].mxu1  ;;  %v1462_v28 = vsel %vm864_vm15, 1.0, %v1916_v22 }
 0x227   : > { %v1074_v29 = vadd.f32 %v2242_v37, %v1073_v26  ;;  %v1624_v32 = vpop.f32.mrb[7].mxu1  ;;  %v1781_v33 = vpack.i.bf16 %v1462_v28, %v1458_v20  ;;  %v971_v34 = vadd.f32 %v970_v25, %v969_v23  ;;  %v1305_v7 = vpop.permute.xlu1 %1304 }
 0x229   : > { %v1078_v18 = vadd.f32 %v1077_v30, %v1074_v29  ;;  %1782 = vrot.lane.b32.xlu1 %v1781_v33, %s1919_s27  ;;  %v972_v36 = vsub.f32 %v971_v34, %v1462_v28  ;;  %v770_v28 = vsel %vm293_vm2, %v2172_v8, %v760_v1  ;;  %v879_v29 = vsel %vm293_vm2, %v2185_v16, %v869_v3 }
 0x22b   : > { %985 = vrot.lane.b32.xlu0 %v972_v36, %s1918_s25  ;;  %vm973_vm0 = vcmp.gt.f32.partialorder %v972_v36, 1.0  ;;  %v1079_v21 = vmul.f32 0.8, %v972_v36  ;;  %v1186_v40 = vmul.f32 0.9, %v1078_v18 }
 0x22c   : > { %v1182_v38 = vpop.f32.mrb[12].mxu0  ;;  %v1466_v43 = vsel %vm973_vm0, 1.0, %v1916_v22 }
 0x22d   : > { %v1183_v39 = vadd.f32 %v2242_v37, %v1182_v38  ;;  %v1635_v41 = vpop.f32.mrb[13].mxu0  ;;  %v1080_v42 = vadd.f32 %v1079_v21, %v1078_v18 }
 0x22e   : > { %v1097_v41 = vsel %vm293_vm2, %v2212_v31, %v1087_v5  ;;  %v1206_v31 = vsel %vm293_vm2, %v2224_v35, %v1196_v4 }
 0x22f   : > { %v1187_v44 = vadd.f32 %v1186_v40, %v1183_v39  ;;  %v1081_v45 = vsub.f32 %v1080_v42, %v1466_v43  ;;  %v988_v40 = vsel %vm293_vm2, %v2199_v27, %v978_v2 }
 0x231   : > { %1094 = vrot.lane.b32.xlu1 %v1081_v45, %s1918_s25  ;;  %vm1082_vm1 = vcmp.gt.f32.partialorder %v1081_v45, 1.0  ;;  %v1188_v46 = vmul.f32 0.8, %v1081_v45  ;;  %v1295_v50 = vmul.f32 0.9, %v1187_v44 }
 0x232   : > { %v1291_v47 = vpop.f32.mrb[8].mxu1  ;;  %v1470_v48 = vsel %vm1082_vm1, 1.0, %v1916_v22 }
 0x233   : > { %v1292_v49 = vadd.f32 %v2242_v37, %v1291_v47  ;;  %v1646_v51 = vpop.f32.mrb[9].mxu1  ;;  %v1786_v52 = vpack.i.bf16 %v1470_v48, %v1466_v43  ;;  %v1189_v53 = vadd.f32 %v1188_v46, %v1187_v44 }
 0x234   : > { %v1315_v51 = vsel %vm293_vm2, %v2233_v17, %v1305_v7 }
 0x235   : > { %v1296_v54 = vadd.f32 %v1295_v50, %v1292_v49  ;;  %1787 = vrot.lane.b32.xlu0 %v1786_v52, %s1919_s27  ;;  %v1190_v56 = vsub.f32 %v1189_v53, %v1470_v48 }
 0x237   : > { %1325 = vst.msk [vmem:[#allocation6] sm:$0xff] %vm1324_vm3, %v1296_v54  ;;  %v1297_v57 = vmul.f32 0.8, %v1190_v56  ;;  %vm1191_vm4 = vcmp.gt.f32.partialorder %v1190_v56, 1.0 }
 0x238   : > { %v1474_v59 = vsel %vm1191_vm4, 1.0, %v1916_v22 }
 0x239   : > { %1203 = vrot.lane.b32.xlu0 %v1190_v56, %s1918_s25  ;;  %v1298_v58 = vadd.f32 %v1297_v57, %v1296_v54 }
 0x23b   : > { %v1299_v60 = vsub.f32 %v1298_v58, %v1474_v59 }
 0x23d   : > { %vm1300_vm5 = vcmp.gt.f32.partialorder %v1299_v60, 1.0  ;;  %1326 = vst.msk [vmem:[#allocation7] sm:$0xff] %vm1324_vm3, %v1299_v60 }
 0x23e   : > { %v1478_v37 = vsel %vm1300_vm5, 1.0, %v1916_v22 }
 0x23f   : > { %v1791_v61 = vpack.i.bf16 %v1478_v37, %v1474_v59  ;;  %1327 = vst.msk [vmem:[#allocation8] sm:$0xff] %vm1324_vm3, %v1478_v37 }
 0x241   : > { %1792 = vrot.lane.b32.xlu1 %v1791_v61, %s1919_s27 }
 0x245   : > { %1312 = vrot.lane.b32.xlu1 %v1299_v60, %s1918_s25 }
 0x283   : > { %v548_v6 = vpop.permute.xlu0 %547 }
 0x28b   : > { %v659_v13 = vpop.permute.xlu1 %658 }
 0x28f   : > { %v1778_v9 = vpop.permute.xlu0 %1777 }
 0x290   : > { %v1780_v22 = vunpack.i.h.bf16 %v1778_v9  ;;  %v1779_v10 = vunpack.i.l.bf16 %v1778_v9 }
 0x292   : > { %v662_v14 = vsel %vm551_vm6, %v661_v12, %v1780_v22  ;;  %v552_v15 = vsel %vm551_vm6, %v550_v11, %v1779_v10 }
 0x293   : > { %v663_v19 = vsel %vm553_vm7, %v662_v14, %v659_v13  ;;  %v554_v20 = vsel %vm553_vm7, %v552_v15, %v548_v6  ;;  %v768_v30 = vpop.permute.xlu0 %767 }
 0x294   : > { %v664_v23 = vsel %vm555_vm8, %v663_v19, 0.0  ;;  %v556_v24 = vsel %vm555_vm8, %v554_v20, 0.0 }
 0x295   : > { %1455 = vst [vmem:[%s2074_s14 + $0x8] sm:$0xff] %v664_v23  ;;  %557 = vst [vmem:[%s2074_s14] sm:$0xff] %v556_v24 }
 0x297   : > { %v877_v55 = vpop.permute.xlu1 %876 }
 0x29b   : > { %v1783_v63 = vpop.permute.xlu1 %1782 }
 0x29c   : > { %v1785_v25 = vunpack.i.h.bf16 %v1783_v63  ;;  %v1784_v26 = vunpack.i.l.bf16 %v1783_v63 }
 0x29d   : > { %v986_v8 = vpop.permute.xlu0 %985 }
 0x29e   : > { %v880_v32 = vsel %vm551_vm6, %v879_v29, %v1785_v25  ;;  %v771_v33 = vsel %vm551_vm6, %v770_v28, %v1784_v26 }
 0x29f   : > { %v881_v34 = vsel %vm553_vm7, %v880_v32, %v877_v55  ;;  %v772_v18 = vsel %vm553_vm7, %v771_v33, %v768_v30 }
 0x2a0   : > { %v882_v36 = vsel %vm555_vm8, %v881_v34, 0.0  ;;  %v773_v21 = vsel %vm555_vm8, %v772_v18, 0.0 }
 0x2a1   : > { %1463 = vst [vmem:[%s2074_s14 + $0x18] sm:$0xff] %v882_v36  ;;  %1459 = vst [vmem:[%s2074_s14 + $0x10] sm:$0xff] %v773_v21 }
 0x2a3   : > { %v1095_v42 = vpop.permute.xlu1 %1094 }
 0x2a7   : > { %v1788_v38 = vpop.permute.xlu0 %1787 }
 0x2a8   : > { %v1790_v16 = vunpack.i.h.bf16 %v1788_v38  ;;  %v1789_v39 = vunpack.i.l.bf16 %v1788_v38 }
 0x2aa   : > { %v1098_v43 = vsel %vm551_vm6, %v1097_v41, %v1790_v16  ;;  %v989_v44 = vsel %vm551_vm6, %v988_v40, %v1789_v39 }
 0x2ab   : > { %v1099_v45 = vsel %vm553_vm7, %v1098_v43, %v1095_v42  ;;  %v990_v46 = vsel %vm553_vm7, %v989_v44, %v986_v8  ;;  %v1204_v52 = vpop.permute.xlu0 %1203 }
 0x2ac   : > { %v1100_v47 = vsel %vm555_vm8, %v1099_v45, 0.0  ;;  %v991_v48 = vsel %vm555_vm8, %v990_v46, 0.0 }
 0x2ad   : > { %1471 = vst [vmem:[%s2074_s14 + $0x28] sm:$0xff] %v1100_v47  ;;  %1467 = vst [vmem:[%s2074_s14 + $0x20] sm:$0xff] %v991_v48 }
 0x2b3   : > { %v1793_v49 = vpop.permute.xlu1 %1792 }
 0x2b4   : > { %v1795_v27 = vunpack.i.h.bf16 %v1793_v49  ;;  %v1794_v50 = vunpack.i.l.bf16 %v1793_v49 }
 0x2b6   : > { %v1207_v53 = vsel %vm551_vm6, %v1206_v31, %v1794_v50  ;;  %v1316_v54 = vsel %vm551_vm6, %v1315_v51, %v1795_v27 }
 0x2b7   : > { %v1208_v56 = vsel %vm553_vm7, %v1207_v53, %v1204_v52  ;;  %v1313_v57 = vpop.permute.xlu1 %1312 }
 0x2b8   : > { %v1209_v35 = vsel %vm555_vm8, %v1208_v56, 0.0  ;;  %v1317_v17 = vsel %vm553_vm7, %v1316_v54, %v1313_v57 }
 0x2b9   : > { %1475 = vst [vmem:[%s2074_s14 + $0x30] sm:$0xff] %v1209_v35  ;;  %v1318_v58 = vsel %vm555_vm8, %v1317_v17, 0.0 }
 0x2ba   : > { %1479 = vst [vmem:[%s2074_s14 + $0x38] sm:$0xff] %v1318_v58 }
 0x2bb   : > { %1839 = shalt.err (!%p1836_p4)
}
 0x2bc   : > { %s1840_s14 = scalar_lea.hbm %s2320_s21, 1024  ;;  %s1844_s25 = scalar_lea.hbm %s2380_s5, 3072 }
 0x2bd   : > { %p1841_p6 = scmp.ne.s32.totalorder %s2320_s21, %s1840_s14  ;;  %p1845_p2 = scmp.lt.u32.totalorder %s2320_s21, %s2380_s5 }
 0x2be   : > { %p1846_p5 = scmp.lt.u32.totalorder %s1844_s25, %s1840_s14  ;;  %p1848_p8 = scmp.lt.u32.totalorder %s1840_s14, %s2320_s21 }
 0x2bf   : > { %p1842_p7 = pnand %p1841_p6, %p2388_p11 }
 0x2c0   : > { %p1847_p9 = por %p1846_p5, %p1845_p2 }
 0x2c1   : > { %p1843_p0 = pneg %p1842_p7 }
 0x2c2   : > { %p1849_p13 = por %p1848_p8, %p1847_p9 }
 0x2c4   : > { %p1850_p10 = pnand %p1849_p13, %p1843_p0 }
 0x2c6   : > { %1853 = shalt.err (!%p1850_p10)
}
 0x2c7   : > { %s1921_s11 = smov 128   ;;  %s1922_s16 = smov 8  }
 0x2c8   : > { %1705 = dma.vmem_to_hbm [thread:$0]  (%p2388_p11), %s2322_s10, 1024, %s2320_s21, %s1329_s17, %s1921_s11, %s1921_s11, %s1922_s16  }
 0x2c9 PF: > { %p1716_p12 = scmp.ge.s32.totalorder %s1908_s23, 2  ;;  %s1358_s30 = sand.u32 1, %s1888_s18  }
 0x2ca   : > { %p2389_p1 = scmp.ne.s32.totalorder %s2385_s8, 0  ;;  %s1359_s24 = scalar_lea.sflag [#allocation11], %s1358_s30 }
 0x2cc   : > { %p1712_p3 = pnand %p1716_p12, %p2389_p1 }
 0x2ce   : > { %1883 = dma.done.wait (!%p1712_p3), %s1359_s24, 1024  }
 0x2cf   : > { %1885 = vsyncadd (!%p1712_p3), %s1359_s24, 4294966272  ;;  %s21_s23 = sadd.s32 1, %s1908_s23   ;;  %s2390_s18 = smov %s1892_s19 }
 0x2d0   : > { %p18_p4 = scmp.ge.s32.totalorder %s21_s23, 5   ;;  %s2391_s19 = smov %s1896_s20 }
 0x2d1   : > { %s2392_s20 = smov %s2009_s7  ;;  %s2393_s21 = smov %s1904_s22 }
 0x2d2   : > { %s2394_s22 = smov %s2396_s26  ;;  %20 = sbr.rel (!%p18_p4) target bundleno = 6 (0x6), region = 103 }
 0x2d9   :  { %1364 = vsyncpa [#allocation10], 1 }
 0x2da   :  { %1366 = vsyncpa [#allocation10 + $0x1], 1 }
 0x2db   :  { %1367 = vsyncpa [#allocation11], 1 }
 0x2dc   :  { %1369 = vsyncpa [#allocation11 + $0x1], 1 }

</bundles_post_ra>
